<compile_context>
chip_gen: v6e
topology: v6e:2x2x1
jax: 0.10.0
libtpu: 0.0.40
codegen_flags: <defaults>
</compile_context>

<pallas_src>
import jax
import jax.numpy as jnp
from jax.experimental import pallas as pl
from jax.experimental.pallas import tpu as pltpu

LN_EPS = 1e-5     # PyTorch nn.LayerNorm default eps
SUB = 8           # f32 sublane tile
LANE = 128        # lane tile
OUT_W = 128       # lane-dense packed-output width (score + attention coeffs)


def _rup(n, m):
    return ((n + m - 1) // m) * m


def _cdiv(a, b):
    return -(-a // b)


# ----------------------------------------------------------------------------
# Parameter init (original PyTorch-like structure) — consumed by the reference
# and by prepare_model().
# ----------------------------------------------------------------------------
def init_linear_params(key, din, dout):
    k1, k2 = jax.random.split(key)
    bound = 1.0 / (din ** 0.5)
    return {"w": jax.random.uniform(k1, (din, dout), jnp.float32, -bound, bound),
            "b": jax.random.uniform(k2, (1, dout), jnp.float32, -bound, bound)}


def init_encoder_params(key, din, hidden, dout, depth):
    keys = jax.random.split(key, 4 + 3 * depth)
    # NOTE: PyTorch initializes LayerNorm affine to ones/zeros; randomized here
    # so the test actually exercises the gamma/beta path.
    p = {"ln0_g": 1.0 + 0.1 * jax.random.normal(keys[0], (1, din), jnp.float32),
         "ln0_b": 0.1 * jax.random.normal(keys[1], (1, din), jnp.float32),
         "lin0": init_linear_params(keys[2], din, hidden),
         "hidden": [],
         "out": init_linear_params(keys[3], hidden, dout)}
    for i in range(depth):
        b = 4 + 3 * i
        p["hidden"].append(
            {"ln_g": 1.0 + 0.1 * jax.random.normal(keys[b], (1, hidden), jnp.float32),
             "ln_b": 0.1 * jax.random.normal(keys[b + 1], (1, hidden), jnp.float32),
             "lin": init_linear_params(keys[b + 2], hidden, hidden)})
    return p


def init_branch_params(key, input_dims, hidden, latent, depth):
    n = len(input_dims)
    keys = jax.random.split(key, 2 * n + 2)
    encoders = [init_encoder_params(keys[i], d, hidden, hidden, depth)
                for i, d in enumerate(input_dims)]
    projs = [init_linear_params(keys[n + i], hidden, latent) for i in range(n)]
    bound = 1.0 / (latent ** 0.5)               # Conv1d(latent, 1, 1): fan_in = latent
    attn_w = jax.random.uniform(keys[-2], (latent, 1), jnp.float32, -bound, bound)
    attn_b = jax.random.uniform(keys[-1], (1, 1), jnp.float32, -bound, bound)
    return {"encoders": encoders, "projs": projs, "attn_w": attn_w, "attn_b": attn_b}


def init_model_params(key, dims0, dims1, hidden, latent, depth):
    k0, k1 = jax.random.split(key)
    b0 = (init_branch_params(k0, dims0, hidden, latent, depth) if len(dims0) > 1
          else init_encoder_params(k0, dims0[0], hidden, latent, depth))
    b1 = (init_branch_params(k1, dims1, hidden, latent, depth) if len(dims1) > 1
          else init_encoder_params(k1, dims1[0], hidden, latent, depth))
    return {"branch0": b0, "branch1": b1}


# ----------------------------------------------------------------------------
# One-time parameter preparation (hoisted out of the forward).
# ----------------------------------------------------------------------------
class _VecBank:
    """Collects all (1, d) vector params into one (n_rows, 128) f32 array."""

    def __init__(self, width):
        self.width = width
        self._rows = []

    def add(self, vec):
        assert vec.ndim == 2 and vec.shape[0] == 1 and vec.shape[1] <= self.width
        row = jnp.zeros((1, self.width), jnp.float32)
        row = row.at[:, :vec.shape[1]].set(vec.astype(jnp.float32))
        self._rows.append(row)
        return len(self._rows) - 1

    def build(self):
        return jnp.concatenate(self._rows, axis=0)


def _prepare_encoder(p, bank):
    depth = len(p["hidden"])
    meta = {"depth": depth,
            "d_in": p["ln0_g"].shape[1],
            "d_out": p["out"]["w"].shape[1],
            "ln0_g": bank.add(p["ln0_g"]), "ln0_b": bank.add(p["ln0_b"]),
            "b_in": bank.add(p["lin0"]["b"]),
            "ln_g": [], "ln_b": [], "b_hid": [],
            "b_out": bank.add(p["out"]["b"])}
    w_hid = []
    for h in p["hidden"]:
        meta["ln_g"].append(bank.add(h["ln_g"]))
        meta["ln_b"].append(bank.add(h["ln_b"]))
        meta["b_hid"].append(bank.add(h["lin"]["b"]))
        w_hid.append(h["lin"]["w"].astype(jnp.bfloat16))
    weights = {"w_in": p["lin0"]["w"].astype(jnp.bfloat16),
               "w_hid": w_hid,
               "w_out": p["out"]["w"].astype(jnp.bfloat16)}
    return weights, meta


def _prepare_multi_branch(p, bank):
    enc = [_prepare_encoder(ep, bank) for ep in p["encoders"]]
    depth = enc[0][1]["depth"]
    attn_w, attn_b = p["attn_w"], p["attn_b"]
    proj_w, b_proj = [], []
    for pp in p["projs"]:
        # Fold the Conv1d attention matvec: extra column = this view's logit.
        w_aug = jnp.concatenate([pp["w"], pp["w"] @ attn_w], axis=1)          # (H, L+1)
        b_aug = jnp.concatenate([pp["b"], pp["b"] @ attn_w + attn_b], axis=1)  # (1, L+1)
        proj_w.append(w_aug.astype(jnp.bfloat16))
        b_proj.append(bank.add(b_aug))
    weights = {"w_in": [ew["w_in"] for ew, _ in enc],          # list of (d_v, H)
               "w_hid": (jnp.stack([w for ew, _ in enc for w in ew["w_hid"]])
                         if depth > 0 else None),              # (V*depth, H, H)
               "w_out": jnp.stack([ew["w_out"] for ew, _ in enc]),   # (V, H, H)
               "w_proj": jnp.stack(proj_w)}                    # (V, H, L+1)
    meta = {"multi": True, "nviews": len(enc), "depth": depth,
            "views": [em for _, em in enc], "b_proj": b_proj}
    return weights, meta


def _prepare_single_branch(p, bank):
    ew, em = _prepare_encoder(p, bank)
    weights = {"w_in": ew["w_in"],
               "w_hid": (jnp.stack(ew["w_hid"]) if em["depth"] > 0 else None),
               "w_out": ew["w_out"]}
    return weights, {"multi": False, "enc": em}


def prepare_model(params, dims0, dims1, hidden, latent):
    vw = _rup(max([hidden, latent + 1] + list(dims0) + list(dims1)), LANE)
    bank = _VecBank(vw)
    prep0 = _prepare_multi_branch if len(dims0) > 1 else _prepare_single_branch
    prep1 = _prepare_multi_branch if len(dims1) > 1 else _prepare_single_branch
    w0, m0 = prep0(params["branch0"], bank)
    w1, m1 = prep1(params["branch1"], bank)
    weights = {"bank": bank.build(), "branch0": w0, "branch1": w1}
    meta = {"branch0": m0, "branch1": m1, "hidden": hidden, "latent": latent,
            "dims0": tuple(dims0), "dims1": tuple(dims1)}
    return weights, meta


# ----------------------------------------------------------------------------
# Batch tiling + fully fused forward (one pallas_call for the whole model).
# ----------------------------------------------------------------------------
def _choose_batch_tiling(B, cap=512):
    """Sublane-aligned batch tiling: >=2 tiles for B>16 (v7x megacore), tiles
    capped at `cap` rows, row padding bounded by ~SUB*ntiles."""
    bp8 = _rup(max(B, 1), SUB)
    if bp8 <= 2 * SUB:
        return bp8, bp8, 1
    ntiles = max(2, _cdiv(bp8, cap))
    tb = _rup(_cdiv(bp8, ntiles), SUB)
    ntiles = _cdiv(bp8, tb)
    return ntiles * tb, tb, ntiles


def plain_multibranch_forward(prepared, x0_list, x1_list):
    weights, meta = prepared
    hidden, latent = meta["hidden"], meta["latent"]
    dims0, dims1 = meta["dims0"], meta["dims1"]
    m0, m1 = meta["branch0"], meta["branch1"]
    multi0, multi1 = m0["multi"], m1["multi"]
    V0, V1 = len(dims0), len(dims1)
    n_cols = 1 + (V0 if multi0 else 0) + (V1 if multi1 else 0)
    assert n_cols <= OUT_W

    B = x0_list[0].shape[0]
    Bp, TB, ntiles = _choose_batch_tiling(B)

    def pad_rows(x):           # batch padding only; feature dims stay unpadded
        x = x.astype(jnp.float32)
        return x if x.shape[0] == Bp else jnp.pad(x, ((0, Bp - x.shape[0]), (0, 0)))

    x0p = tuple(pad_rows(x) for x in x0_list)
    x1p = tuple(pad_rows(x) for x in x1_list)

    bundle = (x0p, x1p, weights)
    leaves, treedef = jax.tree_util.tree_flatten(bundle)
    n_x, n_in = V0 + V1, len(leaves)

    in_specs = []
    for i, leaf in enumerate(leaves):
        if i < n_x:            # activations: tiled over batch
            in_specs.append(pl.BlockSpec((TB, leaf.shape[1]), lambda b: (b, 0)))
        else:                  # params: whole array, VMEM-resident across grid
            in_specs.append(pl.BlockSpec(leaf.shape, lambda b, nd=leaf.ndim: (0,) * nd))

    def kernel(*refs):
        x0_refs, x1_refs, w = jax.tree_util.tree_unflatten(treedef, refs[:n_in])
        out_ref = refs[n_in]
        bank = w["bank"]

        def vec(row, width):                       # (1, width) f32 from the bank
            return bank[row:row + 1, 0:width]

        def layer_norm(x, g, b):                   # mean-subtracted variance
            mu = jnp.mean(x, axis=-1, keepdims=True)
            xc = x - mu
            var = jnp.mean(xc * xc, axis=-1, keepdims=True)
            return xc * jax.lax.rsqrt(var + LN_EPS) * g + b

        def dot(x, w_bf16, b):                     # bf16 MXU operands, f32 accum
            return jnp.dot(x.astype(jnp.bfloat16), w_bf16,
                           preferred_element_type=jnp.float32) + b

        def silu(y):
            return y * jax.nn.sigmoid(y)

        def encoder(x, em, w_in, w_hid_ref, w_out, hid_base):
            # TODO(synk): nn.Dropout is eval-mode identity; training-mode
            # dropout is not implemented.
            h = silu(dot(layer_norm(x, vec(em["ln0_g"], em["d_in"]),
                                    vec(em["ln0_b"], em["d_in"])),
                         w_in, vec(em["b_in"], hidden)))
            for k in range(em["depth"]):
                t = silu(dot(layer_norm(h, vec(em["ln_g"][k], hidden),
                                        vec(em["ln_b"][k], hidden)),
                             w_hid_ref[hid_base + k], vec(em["b_hid"][k], hidden)))
                h = h + t
            return dot(h, w_out, vec(em["b_out"], em["d_out"]))

        def branch(mb, wb, x_refs):
            V, depth = mb["nviews"], mb["depth"]
            projs, logits = [], []
            for v in range(V):
                feat = encoder(x_refs[v][...], mb["views"][v], wb["w_in"][v][...],
                               wb["w_hid"], wb["w_out"][v], v * depth)
                # Projection + folded attention logit in one matmul.
                p_aug = dot(feat, wb["w_proj"][v], vec(mb["b_proj"][v], latent + 1))
                projs.append(p_aug[:, :latent])
                logits.append(p_aug[:, latent:latent + 1])
            # Softmax over a handful of views: per-view (TB,1) columns, pairwise
            # VPU max/add, approx reciprocal on the EUP.
            m = logits[0]
            for l in logits[1:]:
                m = jnp.maximum(m, l)
            es = [jnp.exp(l - m) for l in logits]
            denom = es[0]
            for e in es[1:]:
                denom = denom + e
            inv = pl.reciprocal(denom, approx=True)
            attn = [e * inv for e in es]
            out = attn[0] * projs[0]
            for v in range(1, V):
                out = out + attn[v] * projs[v]
            return out, attn

        if multi0:
            out0, attn0 = branch(m0, w["branch0"], x0_refs)
        else:
            out0 = encoder(x0_refs[0][...], m0["enc"], w["branch0"]["w_in"][...],
                           w["branch0"]["w_hid"], w["branch0"]["w_out"][...], 0)
            attn0 = []
        if multi1:
            out1, attn1 = branch(m1, w["branch1"], x1_refs)
        else:
            out1 = encoder(x1_refs[0][...], m1["enc"], w["branch1"]["w_in"][...],
                           w["branch1"]["w_hid"], w["branch1"]["w_out"][...], 0)
            attn1 = []

        score = jnp.sum(out0 * out1, axis=-1, keepdims=True)       # (TB, 1)
        # Lane-dense packed output: col 0 = score, cols 1.. = attention coeffs.
        lane = jax.lax.broadcasted_iota(jnp.int32, (TB, OUT_W), 1)
        packed = jnp.where(lane == 0, score, 0.0)
        col = 1
        for a in attn0 + attn1:
            packed = packed + jnp.where(lane == col, a, 0.0)
            col += 1
        out_ref[...] = packed

    packed = pl.pallas_call(
        kernel,
        out_shape=jax.ShapeDtypeStruct((Bp, OUT_W), jnp.float32),
        grid=(ntiles,),
        in_specs=in_specs,
        out_specs=pl.BlockSpec((TB, OUT_W), lambda b: (b, 0)),
        compiler_params=pltpu.CompilerParams(
            dimension_semantics=("parallel",),
            vmem_limit_bytes=32 * 1024 * 1024),
    )(*leaves)

    score = packed[:B, 0]
    coeffs, col = [], 1
    if multi0:
        coeffs.append(packed[:B, col:col + V0])
        col += V0
    if multi1:
        coeffs.append(packed[:B, col:col + V1])
    return score, coeffs


# ----------------------------------------------------------------------------
# Pure-JAX reference on the ORIGINAL (unprepared) params; mirrors the bf16
# MXU-operand casts so only fold-level / accumulation-order diffs remain.
# ----------------------------------------------------------------------------
def _ref_ln(x, g, b):
    m = x.mean(-1, keepdims=True)
    xc = x - m
    v = (xc * xc).mean(-1, keepdims=True)
    return xc / jnp.sqrt(v + LN_EPS) * g + b


def _ref_dot(a, w, b=None):
    y = jnp.dot(a.astype(jnp.bfloat16), w.astype(jnp.bfloat16),
                preferred_element_type=jnp.float32)
    return y if b is None else y + b


def _ref_encoder(p, x):
    h = _ref_dot(_ref_ln(x, p["ln0_g"], p["ln0_b"]), p["lin0"]["w"], p["lin0"]["b"])
    h = h * jax.nn.sigmoid(h)
    for hp in p["hidden"]:
        t = _ref_dot(_ref_ln(h, hp["ln_g"], hp["ln_b"]), hp["lin"]["w"], hp["lin"]["b"])
        h = h + t * jax.nn.sigmoid(t)
    return _ref_dot(h, p["out"]["w"], p["out"]["b"])


def _ref_branch(p, x_list):
    feats = [_ref_encoder(ep, x) for ep, x in zip(p["encoders"], x_list)]
    projs = [_ref_dot(f, pp["w"], pp["b"]) for f, pp in zip(feats, p["projs"])]
    logits = jnp.concatenate([_ref_dot(pr, p["attn_w"]) for pr in projs],
                             axis=-1) + p["attn_b"][0, 0]
    attn = jax.nn.softmax(logits, axis=-1)
    out = sum(attn[:, v:v + 1] * projs[v] for v in range(len(projs)))
    return out, attn


def _ref_forward(params, x0_list, x1_list):
    coeffs = []
    if len(x0_list) > 1:
        out0, c0 = _ref_branch(params["branch0"], x0_list)
        coeffs.append(c0)
    else:
        out0 = _ref_encoder(params["branch0"], x0_list[0])
    if len(x1_list) > 1:
        out1, c1 = _ref_branch(params["branch1"], x1_list)
        coeffs.append(c1)
    else:
        out1 = _ref_encoder(params["branch1"], x1_list[0])
    return jnp.sum(out0 * out1, axis=1), coeffs


# ----------------------------------------------------------------------------
if __name__ == "__main__":
    hidden_dim, latent_dim, depth = 32, 64, 1
    configs = [
        ([16, 24], [20], 4),          # branch0 multi-view, branch1 single-view
        ([20], [16, 24, 12], 4),      # branch0 single-view, branch1 multi-view
        ([16, 24], [12, 20], 50),     # both multi-view + multi-tile batch grid
        ([20], [28], 4),              # both single-view (no coefficients)
    ]
    root = jax.random.PRNGKey(0)
    for ci, (dims0, dims1, batch) in enumerate(configs):
        kp, kd = jax.random.split(jax.random.fold_in(root, ci))
        params = init_model_params(kp, dims0, dims1, hidden_dim, latent_dim, depth)
        prepared = prepare_model(params, dims0, dims1, hidden_dim, latent_dim)

        dkeys = jax.random.split(kd, len(dims0) + len(dims1))
        x0 = [jax.random.normal(dkeys[i], (batch, d), jnp.float32)
              for i, d in enumerate(dims0)]
        x1 = [jax.random.normal(dkeys[len(dims0) + i], (batch, d), jnp.float32)
              for i, d in enumerate(dims1)]

        score, coeffs = plain_multibranch_forward(prepared, x0, x1)
        score = jax.block_until_ready(score)
        coeffs = [jax.block_until_ready(c) for c in coeffs]

        ref_score, ref_coeffs = _ref_forward(params, x0, x1)
        assert score.shape == (batch,)
        assert len(coeffs) == len(ref_coeffs)
        assert jnp.allclose(score, ref_score, rtol=2e-2, atol=2e-2)
        for c, rc in zip(coeffs, ref_coeffs):
            assert c.shape == rc.shape
            assert jnp.allclose(c, rc, rtol=2e-2, atol=2e-2)

    print("KERNEL_OK")
</pallas_src>

<mosaic_0001>
module attributes {stable_mosaic.version = 11 : i64} {
  func.func @kernel(%arg0: i32, %arg1: memref<8x16xf32, #tpu.memory_space<vmem>>, %arg2: memref<8x24xf32, #tpu.memory_space<vmem>>, %arg3: memref<8x20xf32, #tpu.memory_space<vmem>>, %arg4: memref<23x128xf32, #tpu.memory_space<vmem>>, %arg5: memref<2x32x32xbf16, #tpu.memory_space<vmem>>, %arg6: memref<16x32xbf16, #tpu.memory_space<vmem>>, %arg7: memref<24x32xbf16, #tpu.memory_space<vmem>>, %arg8: memref<2x32x32xbf16, #tpu.memory_space<vmem>>, %arg9: memref<2x32x65xbf16, #tpu.memory_space<vmem>>, %arg10: memref<1x32x32xbf16, #tpu.memory_space<vmem>>, %arg11: memref<20x32xbf16, #tpu.memory_space<vmem>>, %arg12: memref<32x64xbf16, #tpu.memory_space<vmem>>, %arg13: memref<8x128xf32, #tpu.memory_space<vmem>>) attributes {dimension_semantics = [#tpu.dimension_semantics<parallel>], iteration_bounds = array<i64: 1>, scalar_prefetch = 0 : i64, scratch_operands = 0 : i64, tpu.core_type = #tpu.core_type<tc>, window_params = [{transform_indices = @transform_0, window_bounds = array<i64: 8, 16>}, {transform_indices = @transform_1, window_bounds = array<i64: 8, 24>}, {transform_indices = @transform_2, window_bounds = array<i64: 8, 20>}, {pipeline_mode = #tpu.pipeline_mode<synchronous>, transform_indices = @transform_3, window_bounds = array<i64: 23, 128>}, {pipeline_mode = #tpu.pipeline_mode<synchronous>, transform_indices = @transform_4, window_bounds = array<i64: 2, 32, 32>}, {pipeline_mode = #tpu.pipeline_mode<synchronous>, transform_indices = @transform_5, window_bounds = array<i64: 16, 32>}, {pipeline_mode = #tpu.pipeline_mode<synchronous>, transform_indices = @transform_6, window_bounds = array<i64: 24, 32>}, {pipeline_mode = #tpu.pipeline_mode<synchronous>, transform_indices = @transform_7, window_bounds = array<i64: 2, 32, 32>}, {pipeline_mode = #tpu.pipeline_mode<synchronous>, transform_indices = @transform_8, window_bounds = array<i64: 2, 32, 65>}, {pipeline_mode = #tpu.pipeline_mode<synchronous>, transform_indices = @transform_9, window_bounds = array<i64: 1, 32, 32>}, {pipeline_mode = #tpu.pipeline_mode<synchronous>, transform_indices = @transform_10, window_bounds = array<i64: 20, 32>}, {pipeline_mode = #tpu.pipeline_mode<synchronous>, transform_indices = @transform_11, window_bounds = array<i64: 32, 64>}, {transform_indices = @transform_12, window_bounds = array<i64: 8, 128>}]} {
    %c0 = arith.constant 0 : index
    %c0_0 = arith.constant 0 : index
    %0 = vector.load %arg1[%c0, %c0_0] : memref<8x16xf32, #tpu.memory_space<vmem>>, vector<8x16xf32>
    %c0_1 = arith.constant 0 : index
    %c0_2 = arith.constant 0 : index
    %1 = vector.load %arg6[%c0_1, %c0_2] : memref<16x32xbf16, #tpu.memory_space<vmem>>, vector<16x32xbf16>
    %c0_3 = arith.constant 0 : index
    %c0_4 = arith.constant 0 : index
    %c0_5 = arith.constant 0 : index
    %2 = vector.load %arg8[%c0_3, %c0_4, %c0_5] : memref<2x32x32xbf16, #tpu.memory_space<vmem>>, vector<1x32x32xbf16>
    %3 = vector.shape_cast %2 : vector<1x32x32xbf16> to vector<32x32xbf16>
    %c0_6 = arith.constant 0 : index
    %c0_7 = arith.constant 0 : index
    %4 = vector.load %arg4[%c0_6, %c0_7] : memref<23x128xf32, #tpu.memory_space<vmem>>, vector<1x16xf32>
    %c1 = arith.constant 1 : index
    %c0_8 = arith.constant 0 : index
    %5 = vector.load %arg4[%c1, %c0_8] : memref<23x128xf32, #tpu.memory_space<vmem>>, vector<1x16xf32>
    %cst = arith.constant dense<0.000000e+00> : vector<8xf32>
    %6 = vector.multi_reduction <add>, %0, %cst [1] : vector<8x16xf32> to vector<8xf32>
    %7 = vector.shape_cast %6 : vector<8xf32> to vector<8x1xf32>
    %cst_9 = arith.constant 1.600000e+01 : f32
    %8 = vector.broadcast %cst_9 : f32 to vector<8x1xf32>
    %9 = arith.divf %7, %8 : vector<8x1xf32>
    %10 = vector.broadcast %9 : vector<8x1xf32> to vector<8x16xf32>
    %11 = arith.subf %0, %10 : vector<8x16xf32>
    %12 = arith.mulf %11, %11 : vector<8x16xf32>
    %cst_10 = arith.constant dense<0.000000e+00> : vector<8xf32>
    %13 = vector.multi_reduction <add>, %12, %cst_10 [1] : vector<8x16xf32> to vector<8xf32>
    %14 = vector.shape_cast %13 : vector<8xf32> to vector<8x1xf32>
    %cst_11 = arith.constant 1.600000e+01 : f32
    %15 = vector.broadcast %cst_11 : f32 to vector<8x1xf32>
    %16 = arith.divf %14, %15 : vector<8x1xf32>
    %cst_12 = arith.constant 9.99999974E-6 : f32
    %17 = vector.broadcast %cst_12 : f32 to vector<8x1xf32>
    %18 = arith.addf %16, %17 : vector<8x1xf32>
    %19 = math.rsqrt %18 : vector<8x1xf32>
    %20 = vector.broadcast %19 : vector<8x1xf32> to vector<8x16xf32>
    %21 = arith.mulf %11, %20 : vector<8x16xf32>
    %22 = vector.broadcast %4 : vector<1x16xf32> to vector<8x16xf32>
    %23 = arith.mulf %21, %22 : vector<8x16xf32>
    %24 = vector.broadcast %5 : vector<1x16xf32> to vector<8x16xf32>
    %25 = arith.addf %23, %24 : vector<8x16xf32>
    %c2 = arith.constant 2 : index
    %c0_13 = arith.constant 0 : index
    %26 = vector.load %arg4[%c2, %c0_13] : memref<23x128xf32, #tpu.memory_space<vmem>>, vector<1x32xf32>
    %27 = arith.truncf %25 : vector<8x16xf32> to vector<8x16xbf16>
    %cst_14 = arith.constant dense<0.000000e+00> : vector<8x32xf32>
    %28 = tpu.matmul %27, %1, %cst_14 {dimension_numbers = #tpu.dot_dimension_numbers<[1], [0], [0], [1], [0, 0, 1, 1], [], []>} : vector<8x16xbf16>, vector<16x32xbf16>, vector<8x32xf32> -> vector<8x32xf32>
    %29 = vector.broadcast %26 : vector<1x32xf32> to vector<8x32xf32>
    %30 = arith.addf %28, %29 : vector<8x32xf32>
    %31 = arith.negf %30 : vector<8x32xf32>
    %32 = math.exp %31 : vector<8x32xf32>
    %cst_15 = arith.constant 1.000000e+00 : f32
    %33 = vector.broadcast %cst_15 : f32 to vector<8x32xf32>
    %34 = arith.addf %33, %32 : vector<8x32xf32>
    %35 = arith.divf %33, %34 : vector<8x32xf32>
    %36 = arith.mulf %30, %35 : vector<8x32xf32>
    %c4 = arith.constant 4 : index
    %c0_16 = arith.constant 0 : index
    %37 = vector.load %arg4[%c4, %c0_16] : memref<23x128xf32, #tpu.memory_space<vmem>>, vector<1x32xf32>
    %c5 = arith.constant 5 : index
    %c0_17 = arith.constant 0 : index
    %38 = vector.load %arg4[%c5, %c0_17] : memref<23x128xf32, #tpu.memory_space<vmem>>, vector<1x32xf32>
    %cst_18 = arith.constant dense<0.000000e+00> : vector<8xf32>
    %39 = vector.multi_reduction <add>, %36, %cst_18 [1] : vector<8x32xf32> to vector<8xf32>
    %40 = vector.shape_cast %39 : vector<8xf32> to vector<8x1xf32>
    %cst_19 = arith.constant 3.200000e+01 : f32
    %41 = vector.broadcast %cst_19 : f32 to vector<8x1xf32>
    %42 = arith.divf %40, %41 : vector<8x1xf32>
    %43 = vector.broadcast %42 : vector<8x1xf32> to vector<8x32xf32>
    %44 = arith.subf %36, %43 : vector<8x32xf32>
    %45 = arith.mulf %44, %44 : vector<8x32xf32>
    %cst_20 = arith.constant dense<0.000000e+00> : vector<8xf32>
    %46 = vector.multi_reduction <add>, %45, %cst_20 [1] : vector<8x32xf32> to vector<8xf32>
    %47 = vector.shape_cast %46 : vector<8xf32> to vector<8x1xf32>
    %cst_21 = arith.constant 3.200000e+01 : f32
    %48 = vector.broadcast %cst_21 : f32 to vector<8x1xf32>
    %49 = arith.divf %47, %48 : vector<8x1xf32>
    %cst_22 = arith.constant 9.99999974E-6 : f32
    %50 = vector.broadcast %cst_22 : f32 to vector<8x1xf32>
    %51 = arith.addf %49, %50 : vector<8x1xf32>
    %52 = math.rsqrt %51 : vector<8x1xf32>
    %53 = vector.broadcast %52 : vector<8x1xf32> to vector<8x32xf32>
    %54 = arith.mulf %44, %53 : vector<8x32xf32>
    %55 = vector.broadcast %37 : vector<1x32xf32> to vector<8x32xf32>
    %56 = arith.mulf %54, %55 : vector<8x32xf32>
    %57 = vector.broadcast %38 : vector<1x32xf32> to vector<8x32xf32>
    %58 = arith.addf %56, %57 : vector<8x32xf32>
    %c0_23 = arith.constant 0 : index
    %c0_24 = arith.constant 0 : index
    %c0_25 = arith.constant 0 : index
    %59 = vector.load %arg5[%c0_23, %c0_24, %c0_25] : memref<2x32x32xbf16, #tpu.memory_space<vmem>>, vector<1x32x32xbf16>
    %60 = vector.shape_cast %59 : vector<1x32x32xbf16> to vector<32x32xbf16>
    %c6 = arith.constant 6 : index
    %c0_26 = arith.constant 0 : index
    %61 = vector.load %arg4[%c6, %c0_26] : memref<23x128xf32, #tpu.memory_space<vmem>>, vector<1x32xf32>
    %62 = arith.truncf %58 : vector<8x32xf32> to vector<8x32xbf16>
    %cst_27 = arith.constant dense<0.000000e+00> : vector<8x32xf32>
    %63 = tpu.matmul %62, %60, %cst_27 {dimension_numbers = #tpu.dot_dimension_numbers<[1], [0], [0], [1], [0, 0, 1, 1], [], []>} : vector<8x32xbf16>, vector<32x32xbf16>, vector<8x32xf32> -> vector<8x32xf32>
    %64 = vector.broadcast %61 : vector<1x32xf32> to vector<8x32xf32>
    %65 = arith.addf %63, %64 : vector<8x32xf32>
    %66 = arith.negf %65 : vector<8x32xf32>
    %67 = math.exp %66 : vector<8x32xf32>
    %cst_28 = arith.constant 1.000000e+00 : f32
    %68 = vector.broadcast %cst_28 : f32 to vector<8x32xf32>
    %69 = arith.addf %68, %67 : vector<8x32xf32>
    %70 = arith.divf %68, %69 : vector<8x32xf32>
    %71 = arith.mulf %65, %70 : vector<8x32xf32>
    %72 = arith.addf %36, %71 : vector<8x32xf32>
    %c3 = arith.constant 3 : index
    %c0_29 = arith.constant 0 : index
    %73 = vector.load %arg4[%c3, %c0_29] : memref<23x128xf32, #tpu.memory_space<vmem>>, vector<1x32xf32>
    %74 = arith.truncf %72 : vector<8x32xf32> to vector<8x32xbf16>
    %cst_30 = arith.constant dense<0.000000e+00> : vector<8x32xf32>
    %75 = tpu.matmul %74, %3, %cst_30 {dimension_numbers = #tpu.dot_dimension_numbers<[1], [0], [0], [1], [0, 0, 1, 1], [], []>} : vector<8x32xbf16>, vector<32x32xbf16>, vector<8x32xf32> -> vector<8x32xf32>
    %76 = vector.broadcast %73 : vector<1x32xf32> to vector<8x32xf32>
    %77 = arith.addf %75, %76 : vector<8x32xf32>
    %c0_31 = arith.constant 0 : index
    %c0_32 = arith.constant 0 : index
    %c0_33 = arith.constant 0 : index
    %78 = vector.load %arg9[%c0_31, %c0_32, %c0_33] : memref<2x32x65xbf16, #tpu.memory_space<vmem>>, vector<1x32x65xbf16>
    %79 = vector.shape_cast %78 : vector<1x32x65xbf16> to vector<32x65xbf16>
    %c14 = arith.constant 14 : index
    %c0_34 = arith.constant 0 : index
    %80 = vector.load %arg4[%c14, %c0_34] : memref<23x128xf32, #tpu.memory_space<vmem>>, vector<1x65xf32>
    %81 = arith.truncf %77 : vector<8x32xf32> to vector<8x32xbf16>
    %cst_35 = arith.constant dense<0.000000e+00> : vector<8x65xf32>
    %82 = tpu.matmul %81, %79, %cst_35 {dimension_numbers = #tpu.dot_dimension_numbers<[1], [0], [0], [1], [0, 0, 1, 1], [], []>} : vector<8x32xbf16>, vector<32x65xbf16>, vector<8x65xf32> -> vector<8x65xf32>
    %83 = vector.broadcast %80 : vector<1x65xf32> to vector<8x65xf32>
    %84 = arith.addf %82, %83 : vector<8x65xf32>
    %85 = vector.extract_strided_slice %84 {offsets = [0, 0], sizes = [8, 64], strides = [1, 1]} : vector<8x65xf32> to vector<8x64xf32>
    %86 = vector.extract_strided_slice %84 {offsets = [0, 64], sizes = [8, 1], strides = [1, 1]} : vector<8x65xf32> to vector<8x1xf32>
    %c0_36 = arith.constant 0 : index
    %c0_37 = arith.constant 0 : index
    %87 = vector.load %arg2[%c0_36, %c0_37] : memref<8x24xf32, #tpu.memory_space<vmem>>, vector<8x24xf32>
    %c0_38 = arith.constant 0 : index
    %c0_39 = arith.constant 0 : index
    %88 = vector.load %arg7[%c0_38, %c0_39] : memref<24x32xbf16, #tpu.memory_space<vmem>>, vector<24x32xbf16>
    %c1_40 = arith.constant 1 : index
    %c0_41 = arith.constant 0 : index
    %c0_42 = arith.constant 0 : index
    %89 = vector.load %arg8[%c1_40, %c0_41, %c0_42] : memref<2x32x32xbf16, #tpu.memory_space<vmem>>, vector<1x32x32xbf16>
    %90 = vector.shape_cast %89 : vector<1x32x32xbf16> to vector<32x32xbf16>
    %c7 = arith.constant 7 : index
    %c0_43 = arith.constant 0 : index
    %91 = vector.load %arg4[%c7, %c0_43] : memref<23x128xf32, #tpu.memory_space<vmem>>, vector<1x24xf32>
    %c8 = arith.constant 8 : index
    %c0_44 = arith.constant 0 : index
    %92 = vector.load %arg4[%c8, %c0_44] : memref<23x128xf32, #tpu.memory_space<vmem>>, vector<1x24xf32>
    %cst_45 = arith.constant dense<0.000000e+00> : vector<8xf32>
    %93 = vector.multi_reduction <add>, %87, %cst_45 [1] : vector<8x24xf32> to vector<8xf32>
    %94 = vector.shape_cast %93 : vector<8xf32> to vector<8x1xf32>
    %cst_46 = arith.constant 2.400000e+01 : f32
    %95 = vector.broadcast %cst_46 : f32 to vector<8x1xf32>
    %96 = arith.divf %94, %95 : vector<8x1xf32>
    %97 = vector.broadcast %96 : vector<8x1xf32> to vector<8x24xf32>
    %98 = arith.subf %87, %97 : vector<8x24xf32>
    %99 = arith.mulf %98, %98 : vector<8x24xf32>
    %cst_47 = arith.constant dense<0.000000e+00> : vector<8xf32>
    %100 = vector.multi_reduction <add>, %99, %cst_47 [1] : vector<8x24xf32> to vector<8xf32>
    %101 = vector.shape_cast %100 : vector<8xf32> to vector<8x1xf32>
    %cst_48 = arith.constant 2.400000e+01 : f32
    %102 = vector.broadcast %cst_48 : f32 to vector<8x1xf32>
    %103 = arith.divf %101, %102 : vector<8x1xf32>
    %cst_49 = arith.constant 9.99999974E-6 : f32
    %104 = vector.broadcast %cst_49 : f32 to vector<8x1xf32>
    %105 = arith.addf %103, %104 : vector<8x1xf32>
    %106 = math.rsqrt %105 : vector<8x1xf32>
    %107 = vector.broadcast %106 : vector<8x1xf32> to vector<8x24xf32>
    %108 = arith.mulf %98, %107 : vector<8x24xf32>
    %109 = vector.broadcast %91 : vector<1x24xf32> to vector<8x24xf32>
    %110 = arith.mulf %108, %109 : vector<8x24xf32>
    %111 = vector.broadcast %92 : vector<1x24xf32> to vector<8x24xf32>
    %112 = arith.addf %110, %111 : vector<8x24xf32>
    %c9 = arith.constant 9 : index
    %c0_50 = arith.constant 0 : index
    %113 = vector.load %arg4[%c9, %c0_50] : memref<23x128xf32, #tpu.memory_space<vmem>>, vector<1x32xf32>
    %114 = arith.truncf %112 : vector<8x24xf32> to vector<8x24xbf16>
    %cst_51 = arith.constant dense<0.000000e+00> : vector<8x32xf32>
    %115 = tpu.matmul %114, %88, %cst_51 {dimension_numbers = #tpu.dot_dimension_numbers<[1], [0], [0], [1], [0, 0, 1, 1], [], []>} : vector<8x24xbf16>, vector<24x32xbf16>, vector<8x32xf32> -> vector<8x32xf32>
    %116 = vector.broadcast %113 : vector<1x32xf32> to vector<8x32xf32>
    %117 = arith.addf %115, %116 : vector<8x32xf32>
    %118 = arith.negf %117 : vector<8x32xf32>
    %119 = math.exp %118 : vector<8x32xf32>
    %cst_52 = arith.constant 1.000000e+00 : f32
    %120 = vector.broadcast %cst_52 : f32 to vector<8x32xf32>
    %121 = arith.addf %120, %119 : vector<8x32xf32>
    %122 = arith.divf %120, %121 : vector<8x32xf32>
    %123 = arith.mulf %117, %122 : vector<8x32xf32>
    %c11 = arith.constant 11 : index
    %c0_53 = arith.constant 0 : index
    %124 = vector.load %arg4[%c11, %c0_53] : memref<23x128xf32, #tpu.memory_space<vmem>>, vector<1x32xf32>
    %c12 = arith.constant 12 : index
    %c0_54 = arith.constant 0 : index
    %125 = vector.load %arg4[%c12, %c0_54] : memref<23x128xf32, #tpu.memory_space<vmem>>, vector<1x32xf32>
    %cst_55 = arith.constant dense<0.000000e+00> : vector<8xf32>
    %126 = vector.multi_reduction <add>, %123, %cst_55 [1] : vector<8x32xf32> to vector<8xf32>
    %127 = vector.shape_cast %126 : vector<8xf32> to vector<8x1xf32>
    %cst_56 = arith.constant 3.200000e+01 : f32
    %128 = vector.broadcast %cst_56 : f32 to vector<8x1xf32>
    %129 = arith.divf %127, %128 : vector<8x1xf32>
    %130 = vector.broadcast %129 : vector<8x1xf32> to vector<8x32xf32>
    %131 = arith.subf %123, %130 : vector<8x32xf32>
    %132 = arith.mulf %131, %131 : vector<8x32xf32>
    %cst_57 = arith.constant dense<0.000000e+00> : vector<8xf32>
    %133 = vector.multi_reduction <add>, %132, %cst_57 [1] : vector<8x32xf32> to vector<8xf32>
    %134 = vector.shape_cast %133 : vector<8xf32> to vector<8x1xf32>
    %cst_58 = arith.constant 3.200000e+01 : f32
    %135 = vector.broadcast %cst_58 : f32 to vector<8x1xf32>
    %136 = arith.divf %134, %135 : vector<8x1xf32>
    %cst_59 = arith.constant 9.99999974E-6 : f32
    %137 = vector.broadcast %cst_59 : f32 to vector<8x1xf32>
    %138 = arith.addf %136, %137 : vector<8x1xf32>
    %139 = math.rsqrt %138 : vector<8x1xf32>
    %140 = vector.broadcast %139 : vector<8x1xf32> to vector<8x32xf32>
    %141 = arith.mulf %131, %140 : vector<8x32xf32>
    %142 = vector.broadcast %124 : vector<1x32xf32> to vector<8x32xf32>
    %143 = arith.mulf %141, %142 : vector<8x32xf32>
    %144 = vector.broadcast %125 : vector<1x32xf32> to vector<8x32xf32>
    %145 = arith.addf %143, %144 : vector<8x32xf32>
    %c1_60 = arith.constant 1 : index
    %c0_61 = arith.constant 0 : index
    %c0_62 = arith.constant 0 : index
    %146 = vector.load %arg5[%c1_60, %c0_61, %c0_62] : memref<2x32x32xbf16, #tpu.memory_space<vmem>>, vector<1x32x32xbf16>
    %147 = vector.shape_cast %146 : vector<1x32x32xbf16> to vector<32x32xbf16>
    %c13 = arith.constant 13 : index
    %c0_63 = arith.constant 0 : index
    %148 = vector.load %arg4[%c13, %c0_63] : memref<23x128xf32, #tpu.memory_space<vmem>>, vector<1x32xf32>
    %149 = arith.truncf %145 : vector<8x32xf32> to vector<8x32xbf16>
    %cst_64 = arith.constant dense<0.000000e+00> : vector<8x32xf32>
    %150 = tpu.matmul %149, %147, %cst_64 {dimension_numbers = #tpu.dot_dimension_numbers<[1], [0], [0], [1], [0, 0, 1, 1], [], []>} : vector<8x32xbf16>, vector<32x32xbf16>, vector<8x32xf32> -> vector<8x32xf32>
    %151 = vector.broadcast %148 : vector<1x32xf32> to vector<8x32xf32>
    %152 = arith.addf %150, %151 : vector<8x32xf32>
    %153 = arith.negf %152 : vector<8x32xf32>
    %154 = math.exp %153 : vector<8x32xf32>
    %cst_65 = arith.constant 1.000000e+00 : f32
    %155 = vector.broadcast %cst_65 : f32 to vector<8x32xf32>
    %156 = arith.addf %155, %154 : vector<8x32xf32>
    %157 = arith.divf %155, %156 : vector<8x32xf32>
    %158 = arith.mulf %152, %157 : vector<8x32xf32>
    %159 = arith.addf %123, %158 : vector<8x32xf32>
    %c10 = arith.constant 10 : index
    %c0_66 = arith.constant 0 : index
    %160 = vector.load %arg4[%c10, %c0_66] : memref<23x128xf32, #tpu.memory_space<vmem>>, vector<1x32xf32>
    %161 = arith.truncf %159 : vector<8x32xf32> to vector<8x32xbf16>
    %cst_67 = arith.constant dense<0.000000e+00> : vector<8x32xf32>
    %162 = tpu.matmul %161, %90, %cst_67 {dimension_numbers = #tpu.dot_dimension_numbers<[1], [0], [0], [1], [0, 0, 1, 1], [], []>} : vector<8x32xbf16>, vector<32x32xbf16>, vector<8x32xf32> -> vector<8x32xf32>
    %163 = vector.broadcast %160 : vector<1x32xf32> to vector<8x32xf32>
    %164 = arith.addf %162, %163 : vector<8x32xf32>
    %c1_68 = arith.constant 1 : index
    %c0_69 = arith.constant 0 : index
    %c0_70 = arith.constant 0 : index
    %165 = vector.load %arg9[%c1_68, %c0_69, %c0_70] : memref<2x32x65xbf16, #tpu.memory_space<vmem>>, vector<1x32x65xbf16>
    %166 = vector.shape_cast %165 : vector<1x32x65xbf16> to vector<32x65xbf16>
    %c15 = arith.constant 15 : index
    %c0_71 = arith.constant 0 : index
    %167 = vector.load %arg4[%c15, %c0_71] : memref<23x128xf32, #tpu.memory_space<vmem>>, vector<1x65xf32>
    %168 = arith.truncf %164 : vector<8x32xf32> to vector<8x32xbf16>
    %cst_72 = arith.constant dense<0.000000e+00> : vector<8x65xf32>
    %169 = tpu.matmul %168, %166, %cst_72 {dimension_numbers = #tpu.dot_dimension_numbers<[1], [0], [0], [1], [0, 0, 1, 1], [], []>} : vector<8x32xbf16>, vector<32x65xbf16>, vector<8x65xf32> -> vector<8x65xf32>
    %170 = vector.broadcast %167 : vector<1x65xf32> to vector<8x65xf32>
    %171 = arith.addf %169, %170 : vector<8x65xf32>
    %172 = vector.extract_strided_slice %171 {offsets = [0, 0], sizes = [8, 64], strides = [1, 1]} : vector<8x65xf32> to vector<8x64xf32>
    %173 = vector.extract_strided_slice %171 {offsets = [0, 64], sizes = [8, 1], strides = [1, 1]} : vector<8x65xf32> to vector<8x1xf32>
    %174 = arith.maximumf %86, %173 : vector<8x1xf32>
    %175 = arith.subf %86, %174 : vector<8x1xf32>
    %176 = math.exp %175 : vector<8x1xf32>
    %177 = arith.subf %173, %174 : vector<8x1xf32>
    %178 = math.exp %177 : vector<8x1xf32>
    %179 = arith.addf %176, %178 : vector<8x1xf32>
    %180 = tpu.reciprocal %179 {approx = true} : vector<8x1xf32> -> vector<8x1xf32>
    %181 = arith.mulf %176, %180 : vector<8x1xf32>
    %182 = arith.mulf %178, %180 : vector<8x1xf32>
    %183 = vector.broadcast %181 : vector<8x1xf32> to vector<8x64xf32>
    %184 = arith.mulf %183, %85 : vector<8x64xf32>
    %185 = vector.broadcast %182 : vector<8x1xf32> to vector<8x64xf32>
    %186 = arith.mulf %185, %172 : vector<8x64xf32>
    %187 = arith.addf %184, %186 : vector<8x64xf32>
    %c0_73 = arith.constant 0 : index
    %c0_74 = arith.constant 0 : index
    %188 = vector.load %arg3[%c0_73, %c0_74] : memref<8x20xf32, #tpu.memory_space<vmem>>, vector<8x20xf32>
    %c0_75 = arith.constant 0 : index
    %c0_76 = arith.constant 0 : index
    %189 = vector.load %arg11[%c0_75, %c0_76] : memref<20x32xbf16, #tpu.memory_space<vmem>>, vector<20x32xbf16>
    %c0_77 = arith.constant 0 : index
    %c0_78 = arith.constant 0 : index
    %190 = vector.load %arg12[%c0_77, %c0_78] : memref<32x64xbf16, #tpu.memory_space<vmem>>, vector<32x64xbf16>
    %c16 = arith.constant 16 : index
    %c0_79 = arith.constant 0 : index
    %191 = vector.load %arg4[%c16, %c0_79] : memref<23x128xf32, #tpu.memory_space<vmem>>, vector<1x20xf32>
    %c17 = arith.constant 17 : index
    %c0_80 = arith.constant 0 : index
    %192 = vector.load %arg4[%c17, %c0_80] : memref<23x128xf32, #tpu.memory_space<vmem>>, vector<1x20xf32>
    %cst_81 = arith.constant dense<0.000000e+00> : vector<8xf32>
    %193 = vector.multi_reduction <add>, %188, %cst_81 [1] : vector<8x20xf32> to vector<8xf32>
    %194 = vector.shape_cast %193 : vector<8xf32> to vector<8x1xf32>
    %cst_82 = arith.constant 2.000000e+01 : f32
    %195 = vector.broadcast %cst_82 : f32 to vector<8x1xf32>
    %196 = arith.divf %194, %195 : vector<8x1xf32>
    %197 = vector.broadcast %196 : vector<8x1xf32> to vector<8x20xf32>
    %198 = arith.subf %188, %197 : vector<8x20xf32>
    %199 = arith.mulf %198, %198 : vector<8x20xf32>
    %cst_83 = arith.constant dense<0.000000e+00> : vector<8xf32>
    %200 = vector.multi_reduction <add>, %199, %cst_83 [1] : vector<8x20xf32> to vector<8xf32>
    %201 = vector.shape_cast %200 : vector<8xf32> to vector<8x1xf32>
    %cst_84 = arith.constant 2.000000e+01 : f32
    %202 = vector.broadcast %cst_84 : f32 to vector<8x1xf32>
    %203 = arith.divf %201, %202 : vector<8x1xf32>
    %cst_85 = arith.constant 9.99999974E-6 : f32
    %204 = vector.broadcast %cst_85 : f32 to vector<8x1xf32>
    %205 = arith.addf %203, %204 : vector<8x1xf32>
    %206 = math.rsqrt %205 : vector<8x1xf32>
    %207 = vector.broadcast %206 : vector<8x1xf32> to vector<8x20xf32>
    %208 = arith.mulf %198, %207 : vector<8x20xf32>
    %209 = vector.broadcast %191 : vector<1x20xf32> to vector<8x20xf32>
    %210 = arith.mulf %208, %209 : vector<8x20xf32>
    %211 = vector.broadcast %192 : vector<1x20xf32> to vector<8x20xf32>
    %212 = arith.addf %210, %211 : vector<8x20xf32>
    %c18 = arith.constant 18 : index
    %c0_86 = arith.constant 0 : index
    %213 = vector.load %arg4[%c18, %c0_86] : memref<23x128xf32, #tpu.memory_space<vmem>>, vector<1x32xf32>
    %214 = arith.truncf %212 : vector<8x20xf32> to vector<8x20xbf16>
    %cst_87 = arith.constant dense<0.000000e+00> : vector<8x32xf32>
    %215 = tpu.matmul %214, %189, %cst_87 {dimension_numbers = #tpu.dot_dimension_numbers<[1], [0], [0], [1], [0, 0, 1, 1], [], []>} : vector<8x20xbf16>, vector<20x32xbf16>, vector<8x32xf32> -> vector<8x32xf32>
    %216 = vector.broadcast %213 : vector<1x32xf32> to vector<8x32xf32>
    %217 = arith.addf %215, %216 : vector<8x32xf32>
    %218 = arith.negf %217 : vector<8x32xf32>
    %219 = math.exp %218 : vector<8x32xf32>
    %cst_88 = arith.constant 1.000000e+00 : f32
    %220 = vector.broadcast %cst_88 : f32 to vector<8x32xf32>
    %221 = arith.addf %220, %219 : vector<8x32xf32>
    %222 = arith.divf %220, %221 : vector<8x32xf32>
    %223 = arith.mulf %217, %222 : vector<8x32xf32>
    %c20 = arith.constant 20 : index
    %c0_89 = arith.constant 0 : index
    %224 = vector.load %arg4[%c20, %c0_89] : memref<23x128xf32, #tpu.memory_space<vmem>>, vector<1x32xf32>
    %c21 = arith.constant 21 : index
    %c0_90 = arith.constant 0 : index
    %225 = vector.load %arg4[%c21, %c0_90] : memref<23x128xf32, #tpu.memory_space<vmem>>, vector<1x32xf32>
    %cst_91 = arith.constant dense<0.000000e+00> : vector<8xf32>
    %226 = vector.multi_reduction <add>, %223, %cst_91 [1] : vector<8x32xf32> to vector<8xf32>
    %227 = vector.shape_cast %226 : vector<8xf32> to vector<8x1xf32>
    %cst_92 = arith.constant 3.200000e+01 : f32
    %228 = vector.broadcast %cst_92 : f32 to vector<8x1xf32>
    %229 = arith.divf %227, %228 : vector<8x1xf32>
    %230 = vector.broadcast %229 : vector<8x1xf32> to vector<8x32xf32>
    %231 = arith.subf %223, %230 : vector<8x32xf32>
    %232 = arith.mulf %231, %231 : vector<8x32xf32>
    %cst_93 = arith.constant dense<0.000000e+00> : vector<8xf32>
    %233 = vector.multi_reduction <add>, %232, %cst_93 [1] : vector<8x32xf32> to vector<8xf32>
    %234 = vector.shape_cast %233 : vector<8xf32> to vector<8x1xf32>
    %cst_94 = arith.constant 3.200000e+01 : f32
    %235 = vector.broadcast %cst_94 : f32 to vector<8x1xf32>
    %236 = arith.divf %234, %235 : vector<8x1xf32>
    %cst_95 = arith.constant 9.99999974E-6 : f32
    %237 = vector.broadcast %cst_95 : f32 to vector<8x1xf32>
    %238 = arith.addf %236, %237 : vector<8x1xf32>
    %239 = math.rsqrt %238 : vector<8x1xf32>
    %240 = vector.broadcast %239 : vector<8x1xf32> to vector<8x32xf32>
    %241 = arith.mulf %231, %240 : vector<8x32xf32>
    %242 = vector.broadcast %224 : vector<1x32xf32> to vector<8x32xf32>
    %243 = arith.mulf %241, %242 : vector<8x32xf32>
    %244 = vector.broadcast %225 : vector<1x32xf32> to vector<8x32xf32>
    %245 = arith.addf %243, %244 : vector<8x32xf32>
    %c0_96 = arith.constant 0 : index
    %c0_97 = arith.constant 0 : index
    %c0_98 = arith.constant 0 : index
    %246 = vector.load %arg10[%c0_96, %c0_97, %c0_98] : memref<1x32x32xbf16, #tpu.memory_space<vmem>>, vector<1x32x32xbf16>
    %247 = vector.shape_cast %246 : vector<1x32x32xbf16> to vector<32x32xbf16>
    %c22 = arith.constant 22 : index
    %c0_99 = arith.constant 0 : index
    %248 = vector.load %arg4[%c22, %c0_99] : memref<23x128xf32, #tpu.memory_space<vmem>>, vector<1x32xf32>
    %249 = arith.truncf %245 : vector<8x32xf32> to vector<8x32xbf16>
    %cst_100 = arith.constant dense<0.000000e+00> : vector<8x32xf32>
    %250 = tpu.matmul %249, %247, %cst_100 {dimension_numbers = #tpu.dot_dimension_numbers<[1], [0], [0], [1], [0, 0, 1, 1], [], []>} : vector<8x32xbf16>, vector<32x32xbf16>, vector<8x32xf32> -> vector<8x32xf32>
    %251 = vector.broadcast %248 : vector<1x32xf32> to vector<8x32xf32>
    %252 = arith.addf %250, %251 : vector<8x32xf32>
    %253 = arith.negf %252 : vector<8x32xf32>
    %254 = math.exp %253 : vector<8x32xf32>
    %cst_101 = arith.constant 1.000000e+00 : f32
    %255 = vector.broadcast %cst_101 : f32 to vector<8x32xf32>
    %256 = arith.addf %255, %254 : vector<8x32xf32>
    %257 = arith.divf %255, %256 : vector<8x32xf32>
    %258 = arith.mulf %252, %257 : vector<8x32xf32>
    %259 = arith.addf %223, %258 : vector<8x32xf32>
    %c19 = arith.constant 19 : index
    %c0_102 = arith.constant 0 : index
    %260 = vector.load %arg4[%c19, %c0_102] : memref<23x128xf32, #tpu.memory_space<vmem>>, vector<1x64xf32>
    %261 = arith.truncf %259 : vector<8x32xf32> to vector<8x32xbf16>
    %cst_103 = arith.constant dense<0.000000e+00> : vector<8x64xf32>
    %262 = tpu.matmul %261, %190, %cst_103 {dimension_numbers = #tpu.dot_dimension_numbers<[1], [0], [0], [1], [0, 0, 1, 1], [], []>} : vector<8x32xbf16>, vector<32x64xbf16>, vector<8x64xf32> -> vector<8x64xf32>
    %263 = vector.broadcast %260 : vector<1x64xf32> to vector<8x64xf32>
    %264 = arith.addf %262, %263 : vector<8x64xf32>
    %265 = arith.mulf %187, %264 : vector<8x64xf32>
    %cst_104 = arith.constant dense<0.000000e+00> : vector<8xf32>
    %266 = vector.multi_reduction <add>, %265, %cst_104 [1] : vector<8x64xf32> to vector<8xf32>
    %267 = vector.shape_cast %266 : vector<8xf32> to vector<8x1xf32>
    %268 = tpu.iota {dimensions = array<i32: 1>} : vector<8x128xi32>
    %c0_i32 = arith.constant 0 : i32
    %269 = vector.broadcast %c0_i32 : i32 to vector<8x128xi32>
    %270 = arith.cmpi eq, %268, %269 : vector<8x128xi32>
    %cst_105 = arith.constant 0.000000e+00 : f32
    %271 = vector.shape_cast %267 : vector<8x1xf32> to vector<8x1xf32>
    %272 = vector.broadcast %271 : vector<8x1xf32> to vector<8x128xf32>
    %273 = vector.broadcast %cst_105 : f32 to vector<8x128xf32>
    %274 = arith.select %270, %272, %273 : vector<8x128xi1>, vector<8x128xf32>
    %c1_i32 = arith.constant 1 : i32
    %275 = vector.broadcast %c1_i32 : i32 to vector<8x128xi32>
    %276 = arith.cmpi eq, %268, %275 : vector<8x128xi32>
    %cst_106 = arith.constant 0.000000e+00 : f32
    %277 = vector.shape_cast %181 : vector<8x1xf32> to vector<8x1xf32>
    %278 = vector.broadcast %277 : vector<8x1xf32> to vector<8x128xf32>
    %279 = vector.broadcast %cst_106 : f32 to vector<8x128xf32>
    %280 = arith.select %276, %278, %279 : vector<8x128xi1>, vector<8x128xf32>
    %281 = arith.addf %274, %280 : vector<8x128xf32>
    %c2_i32 = arith.constant 2 : i32
    %282 = vector.broadcast %c2_i32 : i32 to vector<8x128xi32>
    %283 = arith.cmpi eq, %268, %282 : vector<8x128xi32>
    %cst_107 = arith.constant 0.000000e+00 : f32
    %284 = vector.shape_cast %182 : vector<8x1xf32> to vector<8x1xf32>
    %285 = vector.broadcast %284 : vector<8x1xf32> to vector<8x128xf32>
    %286 = vector.broadcast %cst_107 : f32 to vector<8x128xf32>
    %287 = arith.select %283, %285, %286 : vector<8x128xi1>, vector<8x128xf32>
    %288 = arith.addf %281, %287 : vector<8x128xf32>
    %c0_108 = arith.constant 0 : index
    %c0_109 = arith.constant 0 : index
    %289 = vector.load %arg13[%c0_108, %c0_109] : memref<8x128xf32, #tpu.memory_space<vmem>>, vector<8x128xf32>
    tpu.vector_store %arg13[%c0_108, %c0_109], %288 {strides = array<i32>} : memref<8x128xf32, #tpu.memory_space<vmem>>, vector<8x128xf32>,
    return
  }
  func.func @transform_0(%arg0: i32) -> (i32, i32) {
    %c0_i32 = arith.constant 0 : i32
    %c0_i32_0 = arith.constant 0 : i32
    return %arg0, %c0_i32 : i32, i32
  }
  func.func @transform_1(%arg0: i32) -> (i32, i32) {
    %c0_i32 = arith.constant 0 : i32
    %c0_i32_0 = arith.constant 0 : i32
    return %arg0, %c0_i32 : i32, i32
  }
  func.func @transform_2(%arg0: i32) -> (i32, i32) {
    %c0_i32 = arith.constant 0 : i32
    %c0_i32_0 = arith.constant 0 : i32
    return %arg0, %c0_i32 : i32, i32
  }
  func.func @transform_3(%arg0: i32) -> (i32, i32) {
    %c0_i32 = arith.constant 0 : i32
    %c0_i32_0 = arith.constant 0 : i32
    %c0_i32_1 = arith.constant 0 : i32
    return %c0_i32, %c0_i32_0 : i32, i32
  }
  func.func @transform_4(%arg0: i32) -> (i32, i32, i32) {
    %c0_i32 = arith.constant 0 : i32
    %c0_i32_0 = arith.constant 0 : i32
    %c0_i32_1 = arith.constant 0 : i32
    %c0_i32_2 = arith.constant 0 : i32
    return %c0_i32, %c0_i32_0, %c0_i32_1 : i32, i32, i32
  }
  func.func @transform_5(%arg0: i32) -> (i32, i32) {
    %c0_i32 = arith.constant 0 : i32
    %c0_i32_0 = arith.constant 0 : i32
    %c0_i32_1 = arith.constant 0 : i32
    return %c0_i32, %c0_i32_0 : i32, i32
  }
  func.func @transform_6(%arg0: i32) -> (i32, i32) {
    %c0_i32 = arith.constant 0 : i32
    %c0_i32_0 = arith.constant 0 : i32
    %c0_i32_1 = arith.constant 0 : i32
    return %c0_i32, %c0_i32_0 : i32, i32
  }
  func.func @transform_7(%arg0: i32) -> (i32, i32, i32) {
    %c0_i32 = arith.constant 0 : i32
    %c0_i32_0 = arith.constant 0 : i32
    %c0_i32_1 = arith.constant 0 : i32
    %c0_i32_2 = arith.constant 0 : i32
    return %c0_i32, %c0_i32_0, %c0_i32_1 : i32, i32, i32
  }
  func.func @transform_8(%arg0: i32) -> (i32, i32, i32) {
    %c0_i32 = arith.constant 0 : i32
    %c0_i32_0 = arith.constant 0 : i32
    %c0_i32_1 = arith.constant 0 : i32
    %c0_i32_2 = arith.constant 0 : i32
    return %c0_i32, %c0_i32_0, %c0_i32_1 : i32, i32, i32
  }
  func.func @transform_9(%arg0: i32) -> (i32, i32, i32) {
    %c0_i32 = arith.constant 0 : i32
    %c0_i32_0 = arith.constant 0 : i32
    %c0_i32_1 = arith.constant 0 : i32
    %c0_i32_2 = arith.constant 0 : i32
    return %c0_i32, %c0_i32_0, %c0_i32_1 : i32, i32, i32
  }
  func.func @transform_10(%arg0: i32) -> (i32, i32) {
    %c0_i32 = arith.constant 0 : i32
    %c0_i32_0 = arith.constant 0 : i32
    %c0_i32_1 = arith.constant 0 : i32
    return %c0_i32, %c0_i32_0 : i32, i32
  }
  func.func @transform_11(%arg0: i32) -> (i32, i32) {
    %c0_i32 = arith.constant 0 : i32
    %c0_i32_0 = arith.constant 0 : i32
    %c0_i32_1 = arith.constant 0 : i32
    return %c0_i32, %c0_i32_0 : i32, i32
  }
  func.func @transform_12(%arg0: i32) -> (i32, i32) {
    %c0_i32 = arith.constant 0 : i32
    %c0_i32_0 = arith.constant 0 : i32
    return %arg0, %c0_i32 : i32, i32
  }
}

</mosaic_0001>

<bundles_post_ra>
// kernel: tpu_custom_call.1
= control target key start
LH: loop header
LB: loop body
LE: loop exit
PB: predicated region body
PF: predicated region fallthrough
CT: control target
= control target key end

     0   :  { %17 = vsyncpa [#allocation3], 0  ;;  %s1910_s0 = inlined_call_operand.hbm [shape: f32[8,16], index: 0, kind: input, shape index: {}]   ;;  %s1911_s1 = inlined_call_operand.hbm [shape: f32[8,24], index: 1, kind: input, shape index: {}]   ;;  %s1912_s2 = inlined_call_operand.hbm [shape: f32[8,20], index: 2, kind: input, shape index: {}]   ;;  %s1913_s3 = inlined_call_operand.hbm [shape: f32[23,128], index: 3, kind: input, shape index: {}]   ;;  %s1914_s4 = inlined_call_operand.hbm [shape: bf16[2,32,32], index: 4, kind: input, shape index: {}]   ;;  %s1915_s5 = inlined_call_operand.hbm [shape: bf16[16,32], index: 5, kind: input, shape index: {}]   ;;  %s1916_s6 = inlined_call_operand.hbm [shape: bf16[24,32], index: 6, kind: input, shape index: {}]   ;;  %s1917_s7 = inlined_call_operand.hbm [shape: bf16[2,32,32], index: 7, kind: input, shape index: {}]   ;;  %s1918_s8 = inlined_call_operand.hbm [shape: bf16[2,32,65], index: 8, kind: input, shape index: {}]   ;;  %s1919_s9 = inlined_call_operand.vmem [shape: bf16[1,32,32], index: 9, kind: input, shape index: {}]   ;;  %s1920_s10 = inlined_call_operand.hbm [shape: bf16[20,32], index: 10, kind: input, shape index: {}]   ;;  %s1921_s11 = inlined_call_operand.hbm [shape: bf16[32,64], index: 11, kind: input, shape index: {}]   ;;  %s1922_s12 = inlined_call_operand.hbm [shape: f32[8,128], index: 12, kind: output, shape index: {}]  }
   0x1   :  { %18 = vsyncpa [#allocation6], 0 }
   0x2   :  { %19 = vsyncpa [#allocation9], 0 }
   0x3   :  { %20 = vsyncpa [#allocation12], 0 }
   0x4   :  { %21 = vsyncpa [#allocation15], 0 }
   0x5   :  { %22 = vsyncpa [#allocation18], 0 }
   0x6   :  { %23 = vsyncpa [#allocation4], 0  ;;  %s1679_s21 = smov [#allocation5]   ;;  %s1680_s23 = smov [#allocation8]  }
   0x7   :  { %s40_s22 = sshll.u32 %s1679_s21, 4  ;;  %s59_s24 = sshll.u32 %s1680_s23, 4  ;;  %s41_s22 = int_to_ptr.vmem [resolvable:$true] %s40_s22  ;;  %s60_s24 = int_to_ptr.vmem [resolvable:$true] %s59_s24 }
   0x8   :  { %s1433_s25 = scalar_lea.vmem %s41_s22, 128  ;;  %p1438_p1 = scmp.lt.s32.totalorder %s41_s22, %s41_s22 }
   0x9   :  { %p1434_p0 = scmp.ne.s32.totalorder %s41_s22, %s1433_s25  ;;  %p1439_p2 = scmp.lt.s32.totalorder %s1433_s25, %s1433_s25 }
   0xb   :  { %p1440_p3 = por %p1439_p2, %p1438_p1 }
   0xd   :  { %p1441_p4 = pnand %p1440_p3, %p1434_p0 }
   0xf   :  { %1444 = shalt.err (!%p1441_p4)
}
  0x10   :  { %43 = dma.hbm_to_vmem [thread:$0]  %s1911_s1, 128, %s41_s22, [#allocation6]  }
  0x11   :  { %s1453_s28 = scalar_lea.vmem %s60_s24, 384  ;;  %p1458_p6 = scmp.lt.s32.totalorder %s60_s24, %s60_s24 }
  0x12   :  { %p1454_p5 = scmp.ne.s32.totalorder %s60_s24, %s1453_s28  ;;  %p1459_p7 = scmp.lt.s32.totalorder %s1453_s28, %s1453_s28 }
  0x14   :  { %p1460_p8 = por %p1459_p7, %p1458_p6 }
  0x16   :  { %p1461_p9 = pnand %p1460_p8, %p1454_p5 }
  0x18   :  { %1464 = shalt.err (!%p1461_p9)
}
  0x19   :  { %s1681_s29 = smov 128   ;;  %s1682_s30 = smov 8  }
  0x1a   :  { %65 = dma.hbm_to_vmem [thread:$0]  %s1913_s3, 384, %s60_s24, [#allocation9], %s1681_s29, %s1681_s29, %s1682_s30  }
  0x1b   :  { %s1683_s15 = smov [#allocation11]   ;;  %s1684_s17 = smov [#allocation14]  }
  0x1c   :  { %s83_s16 = sshll.u32 %s1683_s15, 4  ;;  %s107_s18 = sshll.u32 %s1684_s17, 4  ;;  %s84_s16 = int_to_ptr.vmem [resolvable:$true] %s83_s16  ;;  %s108_s18 = int_to_ptr.vmem [resolvable:$true] %s107_s18 }
  0x1d   :  { %s1473_s1 = scalar_lea.vmem %s84_s16, 128  ;;  %p1478_p11 = scmp.lt.s32.totalorder %s84_s16, %s84_s16 }
  0x1e   :  { %p1474_p10 = scmp.ne.s32.totalorder %s84_s16, %s1473_s1  ;;  %p1479_p12 = scmp.lt.s32.totalorder %s1473_s1, %s1473_s1 }
  0x20   :  { %p1480_p13 = por %p1479_p12, %p1478_p11 }
  0x22   :  { %p1481_p0 = pnand %p1480_p13, %p1474_p10 }
  0x24   :  { %1484 = shalt.err (!%p1481_p0)
}
  0x25   :  { %s1685_s19 = smov 64   ;;  %s1686_s20 = smov 4  }
  0x26   :  { %89 = dma.hbm_to_vmem [thread:$0]  %s1915_s5, 128, %s84_s16, [#allocation12], %s1685_s19, %s1685_s19, %s1686_s20  }
  0x27   :  { %s1493_s22 = scalar_lea.vmem %s108_s18, 512  ;;  %p1498_p2 = scmp.lt.s32.totalorder %s108_s18, %s108_s18 }
  0x28   :  { %p1494_p1 = scmp.ne.s32.totalorder %s108_s18, %s1493_s22  ;;  %p1499_p3 = scmp.lt.s32.totalorder %s1493_s22, %s1493_s22 }
  0x2a   :  { %p1500_p4 = por %p1499_p3, %p1498_p2 }
  0x2c   :  { %p1501_p5 = pnand %p1500_p4, %p1494_p1 }
  0x2e   :  { %1504 = shalt.err (!%p1501_p5)
}
  0x2f   :  { %113 = dma.hbm_to_vmem [thread:$0]  %s1917_s7, 512, %s108_s18, [#allocation15], %s1685_s19, %s1685_s19, %s1686_s20  }
  0x30   :  { %s1687_s25 = smov [#allocation17]   ;;  %s1688_s27 = smov [#allocation2]  }
  0x31   :  { %s133_s26 = sshll.u32 %s1687_s25, 4  ;;  %s30_s28 = sshll.u32 %s1688_s27, 4  ;;  %s134_s26 = int_to_ptr.vmem [resolvable:$true] %s133_s26  ;;  %s31_s28 = int_to_ptr.vmem [resolvable:$true] %s30_s28 }
  0x32   :  { %s1513_s5 = scalar_lea.vmem %s134_s26, 192  ;;  %p1518_p7 = scmp.lt.s32.totalorder %s134_s26, %s134_s26 }
  0x33   :  { %p1514_p6 = scmp.ne.s32.totalorder %s134_s26, %s1513_s5  ;;  %p1519_p8 = scmp.lt.s32.totalorder %s1513_s5, %s1513_s5 }
  0x35   :  { %p1520_p9 = por %p1519_p8, %p1518_p7 }
  0x37   :  { %p1521_p10 = pnand %p1520_p9, %p1514_p6 }
  0x39   :  { %1524 = shalt.err (!%p1521_p10)
}
  0x3a   :  { %139 = dma.hbm_to_vmem [thread:$0]  %s1920_s10, 192, %s134_s26, [#allocation18], %s1685_s19, %s1685_s19, %s1686_s20  }
  0x3b   :  { %s1533_s7 = scalar_lea.vmem %s31_s28, 128  ;;  %p1538_p12 = scmp.lt.s32.totalorder %s31_s28, %s31_s28 }
  0x3c   :  { %p1534_p11 = scmp.ne.s32.totalorder %s31_s28, %s1533_s7  ;;  %p1539_p13 = scmp.lt.s32.totalorder %s1533_s7, %s1533_s7 }
  0x3e   :  { %p1540_p0 = por %p1539_p13, %p1538_p12 }
  0x40   :  { %p1541_p1 = pnand %p1540_p0, %p1534_p11 }
  0x42   :  { %1544 = shalt.err (!%p1541_p1)
}
  0x43   :  { %33 = dma.hbm_to_vmem [thread:$0]  %s1910_s0, 128, %s31_s28, [#allocation3]  }
  0x44   :  { %s1689_s15 = smov [#allocation7]   ;;  %s1690_s17 = smov [#allocation10]  }
  0x45   :  { %s50_s16 = sshll.u32 %s1689_s15, 4  ;;  %s71_s18 = sshll.u32 %s1690_s17, 4  ;;  %s51_s16 = int_to_ptr.vmem [resolvable:$true] %s50_s16  ;;  %s72_s18 = int_to_ptr.vmem [resolvable:$true] %s71_s18 }
  0x46   :  { %s1553_s1 = scalar_lea.vmem %s51_s16, 128  ;;  %p1558_p3 = scmp.lt.s32.totalorder %s51_s16, %s51_s16 }
  0x47   :  { %p1554_p2 = scmp.ne.s32.totalorder %s51_s16, %s1553_s1  ;;  %p1559_p4 = scmp.lt.s32.totalorder %s1553_s1, %s1553_s1 }
  0x49   :  { %p1560_p5 = por %p1559_p4, %p1558_p3 }
  0x4b   :  { %p1561_p6 = pnand %p1560_p5, %p1554_p2 }
  0x4d   :  { %1564 = shalt.err (!%p1561_p6)
}
  0x4e   :  { %53 = dma.hbm_to_vmem [thread:$0]  %s1912_s2, 128, %s51_s16, [#allocation6]  }
  0x4f   :  { %s1573_s3 = scalar_lea.vmem %s72_s18, 512  ;;  %p1578_p8 = scmp.lt.s32.totalorder %s72_s18, %s72_s18 }
  0x50   :  { %p1574_p7 = scmp.ne.s32.totalorder %s72_s18, %s1573_s3  ;;  %p1579_p9 = scmp.lt.s32.totalorder %s1573_s3, %s1573_s3 }
  0x52   :  { %p1580_p10 = por %p1579_p9, %p1578_p8 }
  0x54   :  { %p1581_p11 = pnand %p1580_p10, %p1574_p7 }
  0x56   :  { %1584 = shalt.err (!%p1581_p11)
}
  0x57   :  { %77 = dma.hbm_to_vmem [thread:$0]  %s1914_s4, 512, %s72_s18, [#allocation9], %s1685_s19, %s1685_s19, %s1686_s20  }
  0x58   :  { %s1691_s23 = smov [#allocation13]   ;;  %s1692_s25 = smov [#allocation16]  }
  0x59   :  { %s95_s24 = sshll.u32 %s1691_s23, 4  ;;  %s119_s26 = sshll.u32 %s1692_s25, 4  ;;  %s96_s24 = int_to_ptr.vmem [resolvable:$true] %s95_s24  ;;  %s120_s26 = int_to_ptr.vmem [resolvable:$true] %s119_s26 }
  0x5a   :  { %s1593_s2 = scalar_lea.vmem %s96_s24, 192  ;;  %p1598_p13 = scmp.lt.s32.totalorder %s96_s24, %s96_s24 }
  0x5b   :  { %p1594_p12 = scmp.ne.s32.totalorder %s96_s24, %s1593_s2  ;;  %p1599_p0 = scmp.lt.s32.totalorder %s1593_s2, %s1593_s2 }
  0x5d   :  { %p1600_p1 = por %p1599_p0, %p1598_p13 }
  0x5f   :  { %p1601_p2 = pnand %p1600_p1, %p1594_p12 }
  0x61   :  { %1604 = shalt.err (!%p1601_p2)
}
  0x62   :  { %101 = dma.hbm_to_vmem [thread:$0]  %s1916_s6, 192, %s96_s24, [#allocation12], %s1685_s19, %s1685_s19, %s1686_s20  }
  0x63   :  { %s1613_s4 = scalar_lea.vmem %s120_s26, 512  ;;  %p1618_p4 = scmp.lt.s32.totalorder %s120_s26, %s120_s26 }
  0x64   :  { %p1614_p3 = scmp.ne.s32.totalorder %s120_s26, %s1613_s4  ;;  %p1619_p5 = scmp.lt.s32.totalorder %s1613_s4, %s1613_s4 }
  0x66   :  { %p1620_p6 = por %p1619_p5, %p1618_p4 }
  0x68   :  { %p1621_p7 = pnand %p1620_p6, %p1614_p3 }
  0x6a   :  { %1624 = shalt.err (!%p1621_p7)
}
  0x6b   :  { %125 = dma.hbm_to_vmem [thread:$0]  %s1918_s8, 512, %s120_s26, [#allocation15], %s1685_s19, %s1685_s19, %s1686_s20  }
  0x6c   :  { %s1693_s30 = smov [#allocation19]  }
  0x6d   :  { %s145_s7 = sshll.u32 %s1693_s30, 4  ;;  %s146_s7 = int_to_ptr.vmem [resolvable:$true] %s145_s7 }
  0x6e   :  { %s1633_s13 = scalar_lea.vmem %s146_s7, 256  ;;  %p1638_p9 = scmp.lt.s32.totalorder %s146_s7, %s146_s7 }
  0x6f   :  { %p1634_p8 = scmp.ne.s32.totalorder %s146_s7, %s1633_s13  ;;  %p1639_p10 = scmp.lt.s32.totalorder %s1633_s13, %s1633_s13 }
  0x71   :  { %p1640_p11 = por %p1639_p10, %p1638_p9 }
  0x73   :  { %p1641_p12 = pnand %p1640_p11, %p1634_p8 }
  0x75   :  { %1644 = shalt.err (!%p1641_p12)
}
  0x76   :  { %151 = dma.hbm_to_vmem [thread:$0]  %s1921_s11, 256, %s146_s7, [#allocation18], %s1685_s19, %s1685_s19, %s1686_s20  }
  0x77   :  { %1665 = dma.done.wait [#allocation3], 128  }
  0x78   :  { %1666 = vsyncadd [#allocation3], 4294967168 }
  0x79   :  { %1667 = dma.done.wait [#allocation6], 256  }
  0x7a   :  { %1668 = vsyncadd [#allocation6], 4294967040 }
  0x7b   :  { %1669 = dma.done.wait [#allocation9], 896  }
  0x7c   :  { %1670 = vsyncadd [#allocation9], 4294966400 }
  0x7d   :  { %1671 = dma.done.wait [#allocation12], 320  }
  0x7e   :  { %1672 = vsyncadd [#allocation12], 4294966976 }
  0x7f   :  { %1673 = dma.done.wait [#allocation15], 1024  }
  0x80   :  { %1674 = vsyncadd [#allocation15], 4294966272 }
  0x81   :  { %1675 = dma.done.wait [#allocation18], 448  }
  0x82   :  { %1676 = vsyncadd [#allocation18], 4294966848  ;;  %vm195_vm0 = vcmask 130048   ;;  %v186_v0 = vld [vmem:[#allocation2] sm:$0xff]  ;;  %v1362_v7 = vld [vmem:[#allocation11] sm:$0xff]   ;;  %v1694_v8 = vmov 0.0  }
  0x83   :  { %v196_v1 = vsel %vm195_vm0, %v186_v0, 0.0  ;;  %1255 = vmatprep.subr.bf16.mxu0 %v1694_v8  ;;  %vm1695_vm1 = vmmov 0   ;;  %1261 = vmatprep.subr.bf16.mxu1 %v1694_v8  ;;  %v1162_v13 = vld [vmem:[#allocation8] ss:$0 sm:$0xff]  ;;  %v1163_v15 = vld [vmem:[#allocation8 + $0x1] ss:$0 sm:$0xff] }
  0x84   :  { %197 = vadd.xlane.f32.xlu0 %v196_v1  ;;  %1257 = vmatprep.mubr.msk.bf16.mxu0 %vm1695_vm1, %v1694_v8  ;;  %v508_v19 = vld [vmem:[#allocation5] sm:$0xff]  ;;  %vm519_vm2 = vcmask 195584   ;;  %v1164_v21 = vld [vmem:[#allocation8 + $0x2] ss:$0 sm:$0xff]  ;;  %vm284_vm3 = vcmask 261120   ;;  %v1364_v44 = vld [vmem:[#allocation10] sm:$0xff]  }
  0x85   :  { %1256 = vmatpush3.bf16.msra.mxu0 %v1362_v7  ;;  %1265 = vmatprep.mubr.msk.bf16.mxu1 %vm1695_vm1, %v1694_v8  ;;  %v520_v20 = vsel %vm519_vm2, %v508_v19, 0.0  ;;  %v1363_v43 = vld [vmem:[#allocation10 + $0x8] sm:$0xff]   ;;  %v1365_v55 = vld [vmem:[#allocation14 + $0x8] sm:$0xff]   ;;  %v1366_v56 = vld [vmem:[#allocation14] sm:$0xff]   ;;  %vm562_vm4 = vcmask 1043456   ;;  %vm873_vm5 = vcmask 162816  }
  0x86   :  { %1269 = vmatprep.subr.bf16.mxu0 %v1694_v8  ;;  %1262 = vmatpush3.bf16.msra.mxu1 %v1363_v43  ;;  %v1168_v49 = vld [vmem:[#allocation8 + $0x4] ss:$0 sm:$0xff]  ;;  %v1169_v51 = vld [vmem:[#allocation8 + $0x5] ss:$0 sm:$0xff]  ;;  %v1369_v57 = vld [vmem:[#allocation16 + $0x8] sm:$0xff]   ;;  %vm916_vm6 = vcmask 1041408  }
  0x87   :  { %1263 = vmatprep.subr.bf16.mxu1 %v1694_v8  ;;  %v1170_v58 = vld [vmem:[#allocation8 + $0x6] ss:$0 sm:$0xff]  ;;  %vm1127_vm7 = vcmask 523264  }
  0x8a   :  { %1264 = vmatpush3.bf16.msra.mxu1 %v1364_v44 }
  0x8b   :  { %1277 = vmatprep.subr.bf16.mxu1 %v1694_v8 }
 0x10d   :  { %v198_v2 = vpop.xlane.xlu0 %197 }
 0x10e   :  { %v200_v3 = vmul.f32 0.0625, %v198_v2 }
 0x110   :  { %v201_v4 = vsub.f32 %v186_v0, %v200_v3 }
 0x112   :  { %v202_v5 = vmul.f32 %v201_v4, %v201_v4 }
 0x114   :  { %v203_v6 = vsel %vm195_vm0, %v202_v5, 0.0 }
 0x115   :  { %204 = vadd.xlane.f32.xlu0 %v203_v6 }
 0x119   :  { %521 = vadd.xlane.f32.xlu0 %v520_v20 }
 0x19e   :  { %v205_v9 = vpop.xlane.xlu0 %204 }
 0x19f   :  { %v206_v10 = vmul.f32 0.0625, %v205_v9 }
 0x1a1   :  { %v207_v11 = vadd.f32 1e-05, %v206_v10 }
 0x1a2   :  { %v522_v33 = vpop.xlane.xlu0 %521 }
 0x1a3   :  { %1383 = vrsqrt.f32 %v207_v11  ;;  %v524_v34 = vmul.f32 0.041666668, %v522_v33  ;;  %v1367_v11 = vld [vmem:[#allocation13 + $0x8] ss:$0 sps:$4 sm:$0xff]  }
 0x1a5   :  { %v525_v37 = vsub.f32 %v508_v19, %v524_v34 }
 0x1a7   :  { %v526_v40 = vmul.f32 %v525_v37, %v525_v37 }
 0x1a9   :  { %v527_v42 = vsel %vm519_vm2, %v526_v40, 0.0  ;;  %v863_v40 = vld [vmem:[#allocation7] sm:$0xff] }
 0x1b0   :  { %v1384_v12 = vpop.eup %1383 }
 0x1b1   :  { %v209_v14 = vmul.f32 %v1384_v12, %v201_v4  ;;  %v1183_v12 = vld [vmem:[#allocation8 + $0x7] ss:$0 sm:$0xff] }
 0x1b3   :  { %v214_v16 = vmul.f32 %v1162_v13, %v209_v14 }
 0x1b5   :  { %v219_v17 = vadd.f32 %v1163_v15, %v214_v16  ;;  %v564_v15 = vsel %vm562_vm4, %v1367_v11, 0 }
 0x1b7   :  { %v221_v18 = vpack.c.bf16 %v219_v17, %v219_v17  ;;  %v1184_v17 = vld [vmem:[#allocation8 + $0x8] ss:$0 sm:$0xff] }
 0x1b9   :  { %1258 = vmatmul.mubr.msk.bf16.vlgmr.msra.gmra.mxu0 %vm195_vm0, %v221_v18  ;;  %v1368_v18 = vld [vmem:[#allocation13] sm:$0xff]  }
 0x1ba   :  { %1273 = vmatprep.mubr.msk.bf16.mxu0 %vm1695_vm1, %v1694_v8  ;;  %1270 = vmatpush3.bf16.msra.mxu0 %v1365_v55 }
 0x1bb   :  { %1271 = vmatprep.subr.bf16.mxu0 %v1694_v8 }
 0x1be   :  { %1272 = vmatpush3.bf16.msra.mxu0 %v1366_v56 }
 0x1bf   :  { %1285 = vmatprep.subr.bf16.mxu0 %v1694_v8 }
 0x279   :  { %v269_v22 = vpop.f32.mrf.mxu0 }
 0x27a   :  { %v270_v23 = vadd.f32 %v1164_v21, %v269_v22  ;;  %v1370_v21 = vld [vmem:[#allocation16] sm:$0xff]   ;;  %v1175_v22 = vld [vmem:[#allocation8 + $0x3] ss:$0 sm:$0xff] }
 0x27b   :  { %v1259_v24 = vpop.f32.mrf.mxu0 }
 0x27c   :  { %v1167_v25 = vmul.f32 -1.442695, %v270_v23 }
 0x27d   :  { %v272_v26 = vpop.f32.mrf.mxu0 }
 0x27e   :  { %1385 = vpow2.f32 %v1167_v25 }
 0x27f   :  { %v1260_v27 = vpop.f32.mrf.mxu0 }
 0x28b   :  { %v1386_v28 = vpop.eup %1385 }
 0x28c   :  { %v278_v29 = vadd.f32 1.0, %v1386_v28 }
 0x28e   :  { %1387 = vrcp.f32 %v278_v29  ;;  %v1185_v29 = vld [vmem:[#allocation8 + $0x9] ss:$0 sm:$0xff] }
 0x29b   :  { %v1388_v30 = vpop.eup %1387 }
 0x29c   :  { %v1830_v31 = vmul.f32 %v1388_v30, %v270_v23 }
 0x29e   :  { %v285_v32 = vsel %vm284_vm3, %v1830_v31, 0.0 }
 0x29f   :  { %286 = vadd.xlane.f32.xlu1 %v285_v32 }
 0x328   :  { %v287_v35 = vpop.xlane.xlu1 %286 }
 0x329   :  { %v289_v36 = vmul.f32 0.03125, %v287_v35 }
 0x32b   :  { %v290_v38 = vsub.f32 %v1830_v31, %v289_v36 }
 0x32d   :  { %v291_v39 = vmul.f32 %v290_v38, %v290_v38 }
 0x32f   :  { %v292_v41 = vsel %vm284_vm3, %v291_v39, 0.0 }
 0x330   :  { %293 = vadd.xlane.f32.xlu1 %v292_v41 }
 0x334   :  { %528 = vadd.xlane.f32.xlu1 %v527_v42  ;;  %v874_v42 = vsel %vm873_vm5, %v863_v40, 0.0 }
 0x3b9   :  { %v294_v45 = vpop.xlane.xlu1 %293 }
 0x3ba   :  { %v295_v46 = vmul.f32 0.03125, %v294_v45 }
 0x3bc   :  { %v296_v47 = vadd.f32 1e-05, %v295_v46 }
 0x3bd   :  { %v529_v1 = vpop.xlane.xlu1 %528 }
 0x3be   :  { %1389 = vrsqrt.f32 %v296_v47  ;;  %v530_v2 = vmul.f32 0.041666668, %v529_v1  ;;  %v1191_v1 = vld [vmem:[#allocation8 + $0xc] ss:$0 sm:$0xff] }
 0x3c0   :  { %v531_v3 = vadd.f32 1e-05, %v530_v2 }
 0x3cb   :  { %v1390_v48 = vpop.eup %1389 }
 0x3cc   :  { %v298_v50 = vmul.f32 %v1390_v48, %v290_v38 }
 0x3ce   :  { %v303_v52 = vmul.f32 %v1168_v49, %v298_v50 }
 0x3d0   :  { %v308_v53 = vadd.f32 %v1169_v51, %v303_v52 }
 0x3d2   :  { %v314_v54 = vpack.c.bf16 %v308_v53, %v308_v53 }
 0x3d4   :  { %1266 = vmatmul.mubr.msk.bf16.vlgmr.msra.gmra.mxu1 %vm284_vm3, %v314_v54 }
 0x3d5   :  { %1281 = vmatprep.mubr.msk.bf16.mxu1 %vm1695_vm1, %v1694_v8  ;;  %1278 = vmatpush3.bf16.msra.mxu1 %v1369_v57  ;;  %v1371_v57 = vld [vmem:[#allocation10 + $0x18] sm:$0xff]  }
 0x3d6   :  { %1279 = vmatprep.subr.bf16.mxu1 %v1694_v8 }
 0x3d9   :  { %1280 = vmatpush3.bf16.msra.mxu1 %v1370_v21 }
 0x3da   :  { %1293 = vmatprep.subr.bf16.mxu1 %v1694_v8 }
 0x494   :  { %v368_v59 = vpop.f32.mrf.mxu1 }
 0x495   :  { %v369_v60 = vadd.f32 %v1170_v58, %v368_v59  ;;  %v1372_v58 = vld [vmem:[#allocation10 + $0x10] sm:$0xff]  }
 0x496   :  { %v1267_v61 = vpop.f32.mrf.mxu1 }
 0x497   :  { %v1174_v62 = vmul.f32 -1.442695, %v369_v60 }
 0x498   :  { %v371_v63 = vpop.f32.mrf.mxu1 }
 0x499   :  { %1391 = vpow2.f32 %v1174_v62  ;;  %v1190_v63 = vld [vmem:[#allocation8 + $0xb] ss:$0 sm:$0xff] }
 0x49a   :  { %v1268_v0 = vpop.f32.mrf.mxu1  ;;  %1393 = vrsqrt.f32 %v531_v3 }
 0x4a6   :  { %v1392_v4 = vpop.eup %1391 }
 0x4a7   :  { %v377_v5 = vadd.f32 1.0, %v1392_v4  ;;  %v1394_v6 = vpop.eup %1393 }
 0x4a8   :  { %v533_v9 = vmul.f32 %v1394_v6, %v525_v37  ;;  %v1374_v6 = vld [vmem:[#allocation14 + $0x10] sm:$0xff]  }
 0x4a9   :  { %1395 = vrcp.f32 %v377_v5  ;;  %v1373_v5 = vld [vmem:[#allocation14 + $0x18] sm:$0xff]  }
 0x4aa   :  { %v538_v16 = vmul.f32 %v1183_v12, %v533_v9  ;;  %v1192_v9 = vld [vmem:[#allocation8 + $0xd] ss:$0 sm:$0xff] }
 0x4ac   :  { %v543_v19 = vadd.f32 %v1184_v17, %v538_v16 }
 0x4ae   :  { %v545_v20 = vpack.c.bf16 %v543_v19, %v543_v19 }
 0x4b6   :  { %v1396_v7 = vpop.eup %1395 }
 0x4b7   :  { %v380_v10 = vmul.f32 %v1396_v7, %v369_v60  ;;  %v1377_v7 = vld [vmem:[#allocation16 + $0x18] sm:$0xff]  }
 0x4b9   :  { %v381_v13 = vadd.f32 %v380_v10, %v1830_v31 }
 0x4bb   :  { %v383_v14 = vpack.c.bf16 %v381_v13, %v381_v13 }
 0x4bd   :  { %1274 = vmatmul.mubr.msk.bf16.vlgmr.msra.gmra.mxu0 %vm284_vm3, %v383_v14 }
 0x4be   :  { %1286 = vmatpush3.bf16.msra.mxu0 %v564_v15  ;;  %1289 = vmatprep.mubr.msk.bf16.mxu0 %vm1695_vm1, %v1694_v8 }
 0x4bf   :  { %1287 = vmatprep.subr.bf16.mxu0 %v1694_v8 }
 0x4c2   :  { %1288 = vmatpush3.bf16.msra.mxu0 %v1368_v18 }
 0x4c3   :  { %1301 = vmatprep.subr.bf16.mxu0 %v1694_v8 }
 0x4c5   :  { %1290 = vmatmul.mubr.msk.bf16.vlgmr.msra.gmra.mxu0 %vm519_vm2, %v545_v20 }
 0x4c6   :  { %1305 = vmatprep.mubr.msk.bf16.mxu0 %vm1695_vm1, %v1694_v8  ;;  %1302 = vmatpush3.bf16.msra.mxu0 %v1373_v5 }
 0x4c7   :  { %1303 = vmatprep.subr.bf16.mxu0 %v1694_v8 }
 0x4ca   :  { %1304 = vmatpush3.bf16.msra.mxu0 %v1374_v6 }
 0x4cb   :  { %1317 = vmatprep.subr.bf16.mxu0 %v1694_v8 }
 0x57d   :  { %v437_v23 = vpop.f32.mrf.mxu0 }
 0x57e   :  { %v438_v24 = vadd.f32 %v1175_v22, %v437_v23 }
 0x57f   :  { %v1275_v25 = vpop.f32.mrf.mxu0 }
 0x580   :  { %v448_v26 = vpack.c.bf16 %v438_v24, %v438_v24  ;;  %v1375_v25 = vld [vmem:[#allocation17 + $0x8] ss:$0 sps:$4 sm:$0x33]  }
 0x581   :  { %v440_v27 = vpop.f32.mrf.mxu0 }
 0x582   :  { %1282 = vmatmul.mubr.msk.bf16.vlgmr.msra.gmra.mxu1 %vm284_vm3, %v448_v26  ;;  %v1205_v26 = vld [vmem:[#allocation8 + $0x10] ss:$0 sm:$0xff] }
 0x583   :  { %v1276_v28 = vpop.f32.mrf.mxu0  ;;  %1297 = vmatprep.mubr.msk.bf16.mxu1 %vm1695_vm1, %v1694_v8  ;;  %1294 = vmatpush3.bf16.msra.mxu1 %v1371_v57 }
 0x584   :  { %1295 = vmatprep.subr.bf16.mxu1 %v1694_v8 }
 0x585   :  { %v600_v30 = vpop.f32.mrf.mxu0 }
 0x586   :  { %v601_v31 = vadd.f32 %v1185_v29, %v600_v30  ;;  %v918_v29 = vsel %vm916_vm6, %v1375_v25, 0  ;;  %v1213_v25 = vld [vmem:[#allocation8 + $0x15] ss:$0 sm:$0xff] }
 0x587   :  { %v1291_v32 = vpop.f32.mrf.mxu0  ;;  %1296 = vmatpush3.bf16.msra.mxu1 %v1372_v58 }
 0x588   :  { %v1189_v33 = vmul.f32 -1.442695, %v601_v31  ;;  %1309 = vmatprep.subr.bf16.mxu1 %v1694_v8  ;;  %v1376_v32 = vld [vmem:[#allocation17] sm:$0xff]  }
 0x589   :  { %v603_v34 = vpop.f32.mrf.mxu0 }
 0x58a   :  { %1397 = vpow2.f32 %v1189_v33 }
 0x58b   :  { %v1292_v35 = vpop.f32.mrf.mxu0 }
 0x58c   :  { %v1378_v35 = vld [vmem:[#allocation16 + $0x10] sm:$0xff]  }
 0x597   :  { %v1398_v36 = vpop.eup %1397 }
 0x598   :  { %v609_v37 = vadd.f32 1.0, %v1398_v36  ;;  %v1197_v36 = vld [vmem:[#allocation8 + $0xa] ss:$0 sm:$0xff] }
 0x59a   :  { %1399 = vrcp.f32 %v609_v37 }
 0x5a7   :  { %v1400_v38 = vpop.eup %1399 }
 0x5a8   :  { %v1858_v39 = vmul.f32 %v1400_v38, %v601_v31  ;;  %v1206_v31 = vld [vmem:[#allocation8 + $0x11] ss:$0 sm:$0xff] }
 0x5aa   :  { %v615_v41 = vsel %vm284_vm3, %v1858_v39, 0.0 }
 0x5ab   :  { %616 = vadd.xlane.f32.xlu0 %v615_v41 }
 0x5af   :  { %875 = vadd.xlane.f32.xlu0 %v874_v42 }
 0x634   :  { %v617_v43 = vpop.xlane.xlu0 %616 }
 0x635   :  { %v618_v44 = vmul.f32 0.03125, %v617_v43  ;;  %v1207_v43 = vld [vmem:[#allocation8 + $0x12] ss:$0 sm:$0xff] }
 0x637   :  { %v619_v45 = vsub.f32 %v1858_v39, %v618_v44 }
 0x638   :  { %v876_v46 = vpop.xlane.xlu0 %875 }
 0x639   :  { %v620_v47 = vmul.f32 %v619_v45, %v619_v45  ;;  %v878_v48 = vmul.f32 0.05, %v876_v46 }
 0x63b   :  { %v621_v49 = vsel %vm284_vm3, %v620_v47, 0.0  ;;  %v879_v50 = vsub.f32 %v863_v40, %v878_v48 }
 0x63c   :  { %622 = vadd.xlane.f32.xlu1 %v621_v49 }
 0x63d   :  { %v880_v51 = vmul.f32 %v879_v50, %v879_v50 }
 0x63f   :  { %v881_v52 = vsel %vm873_vm5, %v880_v51, 0.0 }
 0x640   :  { %882 = vadd.xlane.f32.xlu1 %v881_v52 }
 0x642   :  { %v1866_v53 = vpop.f32.mrf.mxu1 }
 0x644   :  { %v1283_v54 = vpop.f32.mrf.mxu1 }
 0x646   :  { %v505_v55 = vpop.f32.mrf.mxu1 }
 0x648   :  { %v1284_v56 = vpop.f32.mrf.mxu1 }
 0x649   :  { %v1696_v56 = vmov 64  }
 0x64a   :  { %1361 = vset.pattern.permute.xlu1 %v1696_v56  ;;  %1360 = vset.pattern.permute.xlu0 %v1696_v56 }
 0x6c5   :  { %v623_v59 = vpop.xlane.xlu1 %622 }
 0x6c6   :  { %v624_v60 = vmul.f32 0.03125, %v623_v59 }
 0x6c8   :  { %v625_v61 = vadd.f32 1e-05, %v624_v60 }
 0x6c9   :  { %v883_v16 = vpop.xlane.xlu1 %882 }
 0x6ca   :  { %1401 = vrsqrt.f32 %v625_v61  ;;  %v884_v17 = vmul.f32 0.05, %v883_v16 }
 0x6cc   :  { %v885_v18 = vadd.f32 1e-05, %v884_v17 }
 0x6d7   :  { %v1402_v62 = vpop.eup %1401 }
 0x6d8   :  { %v627_v0 = vmul.f32 %v1402_v62, %v619_v45  ;;  %v1179_v62 = vld [vmem:[#allocation8 + $0xe] ss:$0 sm:$0xff] }
 0x6da   :  { %v632_v2 = vmul.f32 %v1190_v63, %v627_v0  ;;  %v1201_v63 = vld [vmem:[#allocation8 + $0xf] ss:$0 sm:$0xff] }
 0x6dc   :  { %v637_v3 = vadd.f32 %v1191_v1, %v632_v2  ;;  %v503_v1 = vadd.f32 %v1179_v62, %v1866_v53  ;;  %v1380_v53 = vld [vmem:[%s1919_s9] sm:$0xff]  }
 0x6de   :  { %v644_v4 = vpack.c.bf16 %v637_v3, %v637_v3 }
 0x6e0   :  { %1298 = vmatmul.mubr.msk.bf16.vlgmr.msra.gmra.mxu1 %vm284_vm3, %v644_v4 }
 0x6e1   :  { %1313 = vmatprep.mubr.msk.bf16.mxu1 %vm1695_vm1, %v1694_v8  ;;  %1310 = vmatpush3.bf16.msra.mxu1 %v1377_v7 }
 0x6e2   :  { %1311 = vmatprep.subr.bf16.mxu1 %v1694_v8 }
 0x6e5   :  { %1312 = vmatpush3.bf16.msra.mxu1 %v1378_v35 }
 0x6e6   :  { %1325 = vmatprep.subr.bf16.mxu1 %v1694_v8 }
 0x7a0   :  { %v698_v10 = vpop.f32.mrf.mxu1 }
 0x7a1   :  { %v699_v11 = vadd.f32 %v1192_v9, %v698_v10 }
 0x7a2   :  { %v1299_v12 = vpop.f32.mrf.mxu1 }
 0x7a3   :  { %v1196_v13 = vmul.f32 -1.442695, %v699_v11 }
 0x7a4   :  { %v701_v14 = vpop.f32.mrf.mxu1 }
 0x7a5   :  { %1403 = vpow2.f32 %v1196_v13  ;;  %v1379_v13 = vld [vmem:[%s1919_s9 + $0x8] sm:$0xff]   ;;  %s1697_s9 = smov [#allocation20]  }
 0x7a6   :  { %v1300_v15 = vpop.f32.mrf.mxu1  ;;  %1405 = vrsqrt.f32 %v885_v18  ;;  %s1148_s15 = sshll.u32 %s1697_s9, 4  ;;  %s1149_s15 = int_to_ptr.vmem [resolvable:$true] %s1148_s15 }
 0x7a7   :  { %s1645_s16 = scalar_lea.vmem %s1149_s15, 128  ;;  %p1650_p0 = scmp.lt.s32.totalorder %s1149_s15, %s1149_s15 }
 0x7a8   :  { %p1646_p13 = scmp.ne.s32.totalorder %s1149_s15, %s1645_s16  ;;  %p1651_p1 = scmp.lt.s32.totalorder %s1645_s16, %s1645_s16 }
 0x7aa   :  { %p1652_p2 = por %p1651_p1, %p1650_p0 }
 0x7ac   :  { %p1653_p3 = pnand %p1652_p2, %p1646_p13 }
 0x7b2   :  { %v1404_v19 = vpop.eup %1403 }
 0x7b3   :  { %v707_v20 = vadd.f32 1.0, %v1404_v19  ;;  %v1406_v21 = vpop.eup %1405 }
 0x7b4   :  { %v887_v23 = vmul.f32 %v1406_v21, %v879_v50 }
 0x7b5   :  { %1407 = vrcp.f32 %v707_v20 }
 0x7b6   :  { %v892_v30 = vmul.f32 %v1205_v26, %v887_v23  ;;  %v1212_v23 = vld [vmem:[#allocation8 + $0x14] ss:$0 sm:$0xff] }
 0x7b8   :  { %v897_v33 = vadd.f32 %v1206_v31, %v892_v30  ;;  %v1382_v30 = vld [vmem:[#allocation19] sm:$0xff]   ;;  %v1214_v31 = vld [vmem:[#allocation8 + $0x16] ss:$0 sm:$0xff] }
 0x7ba   :  { %v899_v34 = vpack.c.bf16 %v897_v33, %v897_v33 }
 0x7c2   :  { %v1408_v22 = vpop.eup %1407 }
 0x7c3   :  { %v710_v24 = vmul.f32 %v1408_v22, %v699_v11 }
 0x7c5   :  { %v711_v27 = vadd.f32 %v710_v24, %v1858_v39 }
 0x7c7   :  { %v713_v28 = vpack.c.bf16 %v711_v27, %v711_v27 }
 0x7c9   :  { %1306 = vmatmul.mubr.msk.bf16.vlgmr.msra.gmra.mxu0 %vm284_vm3, %v713_v28 }
 0x7ca   :  { %1318 = vmatpush3.bf16.msra.mxu0 %v918_v29  ;;  %1321 = vmatprep.mubr.msk.bf16.mxu0 %vm1695_vm1, %v1694_v8  ;;  %v1381_v29 = vld [vmem:[#allocation19 + $0x8] sm:$0xff]  }
 0x7cb   :  { %1319 = vmatprep.subr.bf16.mxu0 %v1694_v8 }
 0x7ce   :  { %1320 = vmatpush3.bf16.msra.mxu0 %v1376_v32 }
 0x7cf   :  { %1333 = vmatprep.subr.bf16.mxu0 %v1694_v8 }
 0x7d1   :  { %1322 = vmatmul.mubr.msk.bf16.vlgmr.msra.gmra.mxu0 %vm873_vm5, %v899_v34 }
 0x7d2   :  { %1337 = vmatprep.mubr.msk.bf16.mxu0 %vm1695_vm1, %v1694_v8  ;;  %1334 = vmatpush3.bf16.msra.mxu0 %v1381_v29 }
 0x7d3   :  { %1335 = vmatprep.subr.bf16.mxu0 %v1694_v8 }
 0x7d6   :  { %1336 = vmatpush3.bf16.msra.mxu0 %v1382_v30 }
 0x889   :  { %v767_v37 = vpop.f32.mrf.mxu0 }
 0x88a   :  { %v768_v38 = vadd.f32 %v1197_v36, %v767_v37 }
 0x88b   :  { %v1307_v39 = vpop.f32.mrf.mxu0 }
 0x88c   :  { %v779_v40 = vpack.c.bf16 %v768_v38, %v768_v38 }
 0x88d   :  { %v770_v41 = vpop.f32.mrf.mxu0 }
 0x88e   :  { %1314 = vmatmul.mubr.msk.bf16.vlgmr.msra.gmra.mxu1 %vm284_vm3, %v779_v40 }
 0x88f   :  { %v1308_v42 = vpop.f32.mrf.mxu0  ;;  %1329 = vmatprep.mubr.msk.bf16.mxu1 %vm1695_vm1, %v1694_v8  ;;  %1326 = vmatpush3.bf16.msra.mxu1 %v1379_v13 }
 0x890   :  { %1327 = vmatprep.subr.bf16.mxu1 %v1694_v8 }
 0x891   :  { %v954_v44 = vpop.f32.mrf.mxu0 }
 0x892   :  { %v955_v45 = vadd.f32 %v1207_v43, %v954_v44 }
 0x893   :  { %v1323_v46 = vpop.f32.mrf.mxu0  ;;  %1328 = vmatpush3.bf16.msra.mxu1 %v1380_v53 }
 0x894   :  { %v1211_v47 = vmul.f32 -1.442695, %v955_v45 }
 0x895   :  { %v957_v48 = vpop.f32.mrf.mxu0 }
 0x896   :  { %1409 = vpow2.f32 %v1211_v47  ;;  %v1219_v47 = vld [vmem:[#allocation8 + $0x13] ss:$0 sm:$0xff] }
 0x897   :  { %v1324_v49 = vpop.f32.mrf.mxu0 }
 0x8a3   :  { %v1410_v50 = vpop.eup %1409 }
 0x8a4   :  { %v963_v51 = vadd.f32 1.0, %v1410_v50 }
 0x8a6   :  { %1411 = vrcp.f32 %v963_v51 }
 0x8b3   :  { %v1412_v52 = vpop.eup %1411 }
 0x8b4   :  { %v1889_v54 = vmul.f32 %v1412_v52, %v955_v45 }
 0x8b6   :  { %v969_v55 = vsel %vm284_vm3, %v1889_v54, 0.0 }
 0x8b7   :  { %970 = vadd.xlane.f32.xlu0 %v969_v55 }
 0x940   :  { %v971_v57 = vpop.xlane.xlu0 %970 }
 0x941   :  { %v972_v58 = vmul.f32 0.03125, %v971_v57 }
 0x943   :  { %v973_v59 = vsub.f32 %v1889_v54, %v972_v58  ;;  %v1131_v58 = vlaneseq }
 0x945   :  { %v974_v60 = vmul.f32 %v973_v59, %v973_v59 }
 0x947   :  { %v975_v61 = vsel %vm284_vm3, %v974_v60, 0.0 }
 0x948   :  { %976 = vadd.xlane.f32.xlu1 %v975_v61 }
 0x94e   :  { %v833_v0 = vpop.f32.mrf.mxu1 }
 0x94f   :  { %v834_v2 = vadd.f32 %v1201_v63, %v833_v0 }
 0x950   :  { %v1315_v3 = vpop.f32.mrf.mxu1 }
 0x951   :  { %v839_v4 = vmax.f32 %v503_v1, %v834_v2 }
 0x952   :  { %v836_v5 = vpop.f32.mrf.mxu1 }
 0x953   :  { %v840_v6 = vsub.f32 %v503_v1, %v839_v4  ;;  %v843_v7 = vsub.f32 %v834_v2, %v839_v4 }
 0x954   :  { %v1316_v9 = vpop.f32.mrf.mxu1 }
 0x955   :  { %v841_v10 = vmul.f32 1.442695, %v840_v6  ;;  %v844_v11 = vmul.f32 1.442695, %v843_v7 }
 0x957   :  { %1413 = vpow2.f32 %v841_v10 }
 0x958   :  { %1415 = vpow2.f32 %v844_v11 }
 0x964   :  { %v1414_v12 = vpop.eup %1413 }
 0x965   :  { %v1416_v14 = vpop.eup %1415 }
 0x966   :  { %v846_v15 = vadd.f32 %v1416_v14, %v1414_v12 }
 0x968   :  { %1417 = vrcp.f32 %v846_v15 }
 0x975   :  { %v1418_v16 = vpop.eup %1417 }
 0x976   :  { %v848_v17 = vmul.f32 %v1418_v16, %v1414_v12  ;;  %v849_v18 = vmul.f32 %v1418_v16, %v1416_v14 }
 0x978   :  { %852 = vperm.xlu0 %1360, %v848_v17   ;;  %858 = vperm.xlu1 %1361, %v849_v18  }
 0x9d1   :  { %v977_v19 = vpop.xlane.xlu1 %976 }
 0x9d2   :  { %v978_v20 = vmul.f32 0.03125, %v977_v19 }
 0x9d4   :  { %v979_v21 = vadd.f32 1e-05, %v978_v20 }
 0x9d6   :  { %1419 = vrsqrt.f32 %v979_v21 }
 0x9e3   :  { %v1420_v22 = vpop.eup %1419 }
 0x9e4   :  { %v981_v24 = vmul.f32 %v1420_v22, %v973_v59 }
 0x9e6   :  { %v986_v26 = vmul.f32 %v1212_v23, %v981_v24 }
 0x9e8   :  { %v991_v27 = vadd.f32 %v1213_v25, %v986_v26 }
 0x9ea   :  { %v997_v28 = vpack.c.bf16 %v991_v27, %v991_v27 }
 0x9ec   :  { %1330 = vmatmul.mubr.msk.bf16.vlgmr.msra.gmra.mxu1 %vm284_vm3, %v997_v28 }
 0x9f3   :  { %v859_v8 = vpop.permute.xlu1 %858  ;;  %v853_v44 = vpop.permute.xlu0 %852 }
 0x9f4   :  { %v861_v45 = vmul.f32 %v859_v8, %v834_v2  ;;  %v855_v46 = vmul.f32 %v853_v44, %v503_v1 }
 0x9f6   :  { %v862_v49 = vadd.f32 %v861_v45, %v855_v46 }
 0xaac   :  { %v1051_v32 = vpop.f32.mrf.mxu1 }
 0xaad   :  { %v1052_v33 = vadd.f32 %v1214_v31, %v1051_v32 }
 0xaae   :  { %v1331_v34 = vpop.f32.mrf.mxu1 }
 0xaaf   :  { %v1218_v35 = vmul.f32 -1.442695, %v1052_v33 }
 0xab0   :  { %v1054_v36 = vpop.f32.mrf.mxu1 }
 0xab1   :  { %1421 = vpow2.f32 %v1218_v35 }
 0xab2   :  { %v1332_v37 = vpop.f32.mrf.mxu1 }
 0xabe   :  { %v1422_v38 = vpop.eup %1421 }
 0xabf   :  { %v1060_v39 = vadd.f32 1.0, %v1422_v38 }
 0xac1   :  { %1423 = vrcp.f32 %v1060_v39 }
 0xace   :  { %v1424_v40 = vpop.eup %1423 }
 0xacf   :  { %v1063_v41 = vmul.f32 %v1424_v40, %v1052_v33 }
 0xad1   :  { %v1064_v42 = vadd.f32 %v1063_v41, %v1889_v54  ;;  %v1132_v54 = vand.u32 127, %v1131_v58 }
 0xad3   :  { %v1066_v43 = vpack.c.bf16 %v1064_v42, %v1064_v42  ;;  %vm1135_vm8 = vcmp.eq.s32.totalorder %v1132_v54, 1  ;;  %vm1133_vm9 = vcmp.eq.s32.totalorder %v1132_v54, 0  ;;  %vm1138_vm10 = vcmp.eq.s32.totalorder %v1132_v54, 2 }
 0xad4   :  { %v1136_v60 = vsel %vm1135_vm8, %v853_v44, 0.0  ;;  %v1139_v63 = vsel %vm1138_vm10, %v859_v8, 0.0 }
 0xad5   :  { %1338 = vmatmul.mubr.msk.bf16.vlgmr.msra.gmra.mxu0 %vm284_vm3, %v1066_v43 }
 0xb95   :  { %v1120_v48 = vpop.f32.mrf.mxu0 }
 0xb96   :  { %v1121_v50 = vadd.f32 %v1219_v47, %v1120_v48 }
 0xb97   :  { %v1339_v51 = vpop.f32.mrf.mxu0 }
 0xb98   :  { %v1126_v52 = vmul.f32 %v1121_v50, %v862_v49 }
 0xb99   :  { %v1123_v55 = vpop.f32.mrf.mxu0 }
 0xb9a   :  { %v1128_v56 = vsel %vm1127_vm7, %v1126_v52, 0.0 }
 0xb9b   :  { %1129 = vadd.xlane.f32.xlu1 %v1128_v56  ;;  %v1340_v57 = vpop.f32.mrf.mxu0 }
 0xc24   :  { %v1130_v59 = vpop.xlane.xlu1 %1129 }
 0xc25   :  { %v1134_v61 = vsel %vm1133_vm9, %v1130_v59, 0.0 }
 0xc26   :  { %v1137_v62 = vadd.f32 %v1136_v60, %v1134_v61 }
 0xc28   :  { %v1140_v0 = vadd.f32 %v1139_v63, %v1137_v62 }
 0xc2a   :  { %1141 = vst [vmem:[#allocation20] sm:$0xff] %v1140_v0 }
 0xc2b   :  { %1656 = shalt.err (!%p1653_p3)
}
 0xc2c   :  { %1151 = dma.vmem_to_hbm [thread:$0]  %s1149_s15, 128, %s1922_s12, [#allocation4]  }
 0xc2d   :  { %1677 = dma.done.wait [#allocation4], 128  }
 0xc2e   :  { %1678 = vsyncadd [#allocation4], 4294967168 }
 0xc2f   :  { %1155 = vsyncpa [#allocation3], 1 }
 0xc30   :  { %1156 = vsyncpa [#allocation6], 1 }
 0xc31   :  { %1157 = vsyncpa [#allocation9], 1 }
 0xc32   :  { %1158 = vsyncpa [#allocation12], 1 }
 0xc33   :  { %1159 = vsyncpa [#allocation15], 1 }
 0xc34   :  { %1160 = vsyncpa [#allocation18], 1 }
 0xc35   :  { %1161 = vsyncpa [#allocation4], 1 }

</bundles_post_ra>
